<compile_context>
chip_gen: v7x
topology: tpu7x:2x2x1
jax: 0.10.0
libtpu: 0.0.40
codegen_flags: <defaults>
</compile_context>

<pallas_src>
import functools
import math

import numpy as np
import jax
import jax.numpy as jnp
from jax.experimental import pallas as pl
from jax.experimental.pallas import tpu as pltpu


def block_kernel(x_ref, ctx_ref, sbias_ref, cbias_ref,
                 g1_ref, b1_ref, g2_ref, b2_ref,
                 wqkv_ref, bqkv_ref, wo_ref, bo_ref,
                 cwq_ref, cbq_ref, cwkv_ref, cbkv_ref, cwo_ref, cbo_ref,
                 w1_ref, bm1_ref, w2_ref, bm2_ref,
                 o_ref, *, n_head, eps):
    # x_ref : (bb, T, C)   ctx_ref : (bb, Tc, C)
    # sbias_ref : (H*bb*T, H*bb*T)   cbias_ref : (H*bb*T, H*bb*Tc)
    bb, T, C = x_ref.shape
    Tc = ctx_ref.shape[1]
    H = n_head
    D = C // H
    M, Mk = bb * T, bb * Tc
    cdt = wqkv_ref.dtype            # MXU operand dtype (bf16 or f32)

    # (bb, T, C) -> (bb*T, C): layout-preserving leading-dim collapse.
    x = x_ref[...].reshape(M, C)
    ctx = ctx_ref[...].reshape(Mk, C)

    def layer_norm(h, g, b):
        mu = jnp.mean(h, axis=-1, keepdims=True)
        var = jnp.mean((h - mu) ** 2, axis=-1, keepdims=True)
        return (h - mu) * jax.lax.rsqrt(var + eps) * g + b

    def gelu(z):
        # TODO(synk): PyTorch nn.GELU() defaults to the exact erf form; erf has
        # no guaranteed Mosaic lowering, so the tanh approximation (1 EUP op)
        # is used here (max deviation ~1e-3 from the erf form).
        c = 0.7978845608028654  # sqrt(2/pi)
        return 0.5 * z * (1.0 + jnp.tanh(c * (z + 0.044715 * z * z * z)))

    def matmul(a, w_ref, b_ref):
        # bf16 (or f32) MXU operands, f32 accumulation, f32 bias add.
        return jnp.dot(a.astype(cdt), w_ref[...],
                       preferred_element_type=jnp.float32) + b_ref[...]

    def stack_heads(a):             # (rows, H*D) -> (H*rows, D)
        return jnp.concatenate([a[:, h * D:(h + 1) * D] for h in range(H)],
                               axis=0)

    def unstack_heads(a, rows):     # (H*rows, D) -> (rows, H*D)
        return jnp.concatenate([a[h * rows:(h + 1) * rows, :] for h in range(H)],
                               axis=1)

    def attention(q, k, v, bias):
        # Heads & batch stacked along sublanes; `bias` is the precomputed
        # block-diagonal (head, batch) [+ causal] additive mask, so the whole
        # attention is 2 dense matmuls + one vectorized softmax.
        qs, ks, vs = stack_heads(q), stack_heads(k), stack_heads(v)
        s = jax.lax.dot_general(qs.astype(cdt), ks.astype(cdt),
                                (((1,), (1,)), ((), ())),
                                preferred_element_type=jnp.float32)
        s = s + bias                           # scale already folded into Wq
        s = s - jnp.max(s, axis=-1, keepdims=True)
        p = jnp.exp(s)                         # single transcendental
        # Exact divide keeps tight parity with the f32 reference; swap to
        # p * pl.reciprocal(sum, approx=True) if the epilogue becomes EUP-bound.
        p = p / jnp.sum(p, axis=-1, keepdims=True)
        ys = jnp.dot(p.astype(cdt), vs.astype(cdt),
                     preferred_element_type=jnp.float32)
        return unstack_heads(ys, q.shape[0])

    # ---- x = x + SelfAttention(LN1(x)) -------------------------------------
    hn = layer_norm(x, g1_ref[...], b1_ref[...])
    qkv = matmul(hn, wqkv_ref, bqkv_ref)               # (M, 3C), Q pre-scaled
    y = attention(qkv[:, :C], qkv[:, C:2 * C], qkv[:, 2 * C:], sbias_ref[...])
    x = x + matmul(y, wo_ref, bo_ref)

    # ---- x = x + CrossAttention(LN2(x), context) ---------------------------
    hn = layer_norm(x, g2_ref[...], b2_ref[...])
    q = matmul(hn, cwq_ref, cbq_ref)                   # (M, C), pre-scaled
    kv = matmul(ctx, cwkv_ref, cbkv_ref)               # (Mk, 2C)
    y = attention(q, kv[:, :C], kv[:, C:], cbias_ref[...])
    x = x + matmul(y, cwo_ref, cbo_ref)

    # ---- x = x + MLP(LN2(x))  (the PyTorch Block reuses ln2 here) ----------
    hn = layer_norm(x, g2_ref[...], b2_ref[...])
    x = x + matmul(gelu(matmul(hn, w1_ref, bm1_ref)), w2_ref, bm2_ref)

    o_ref[...] = x.reshape(bb, T, C).astype(o_ref.dtype)


def _attn_bias(bb, T, Tk, n_head, causal):
    """Additive bias over head/batch-stacked rows: 0 where attention is
    allowed (same head, same batch element, causal), -1e30 elsewhere."""
    h_r = np.repeat(np.arange(n_head), bb * T)
    b_r = np.tile(np.repeat(np.arange(bb), T), n_head)
    t_r = np.tile(np.arange(T), n_head * bb)
    h_c = np.repeat(np.arange(n_head), bb * Tk)
    b_c = np.tile(np.repeat(np.arange(bb), Tk), n_head)
    t_c = np.tile(np.arange(Tk), n_head * bb)
    keep = (h_r[:, None] == h_c[None, :]) & (b_r[:, None] == b_c[None, :])
    if causal:
        keep = keep & (t_c[None, :] <= t_r[:, None])
    return jnp.asarray(np.where(keep, 0.0, -1e30), dtype=jnp.float32)


def transformer_block(x, context, params, *, n_head, causal_self=True,
                      causal_cross=False, eps=1e-5,
                      matmul_dtype=jnp.bfloat16):
    """Forward of `Block` (inference: dropout = identity). Returns (x, context)."""
    B, T, C = x.shape
    Bc, Tc, Cc = context.shape
    assert B == Bc and C == Cc and C % n_head == 0
    D = C // n_head
    scale = 1.0 / math.sqrt(D)
    p = params
    f32 = jnp.float32

    # v7x has 2 TensorCores -> keep 2 "parallel" grid steps when the batch
    # splits evenly; otherwise fold the whole batch into one step (v5e/v6e are
    # single-TC, so fewer grid steps == less per-step overhead).
    num_steps = 2 if (B % 2 == 0 and B >= 4) else 1
    bb = B // num_steps

    row = lambda a: a.reshape(1, -1).astype(f32)          # f32 bias rows
    wdt = lambda a: a.astype(matmul_dtype)                 # MXU operand dtype

    # Fold 1/sqrt(D) into the query projections (removes a per-score multiply).
    wq_s, bq_s = p["wq_s"] * scale, p["bq_s"] * scale
    wq_c, bq_c = p["wq_c"] * scale, p["bq_c"] * scale

    # Fuse Q/K/V (self-attn) and K/V (cross-attn) projection weights so the
    # MXU matmuls see the widest possible lane-dense N.
    wqkv = wdt(jnp.concatenate([wq_s, p["wk_s"], p["wv_s"]], axis=1))   # (C,3C)
    bqkv = row(jnp.concatenate([bq_s, p["bk_s"], p["bv_s"]]))
    wkv_c = wdt(jnp.concatenate([p["wk_c"], p["wv_c"]], axis=1))        # (C,2C)
    bkv_c = row(jnp.concatenate([p["bk_c"], p["bv_c"]]))

    sbias = _attn_bias(bb, T, T, n_head, causal_self)
    cbias = _attn_bias(bb, T, Tc, n_head, causal_cross)

    inputs = (
        x.astype(f32), context.astype(f32), sbias, cbias,
        row(p["ln1_g"]), row(p["ln1_b"]), row(p["ln2_g"]), row(p["ln2_b"]),
        wqkv, bqkv, wdt(p["wo_s"]), row(p["bo_s"]),
        wdt(wq_c), row(bq_c), wkv_c, bkv_c, wdt(p["wo_c"]), row(p["bo_c"]),
        wdt(p["w1"]), row(p["b1"]), wdt(p["w2"]), row(p["b2"]),
    )

    def resident(a):
        # Constant index_map: fetched once, stays VMEM-resident over the grid.
        return pl.BlockSpec(a.shape, lambda s: (0,) * a.ndim)

    in_specs = [pl.BlockSpec((bb, T, C), lambda s: (s, 0, 0)),
                pl.BlockSpec((bb, Tc, C), lambda s: (s, 0, 0))]
    in_specs += [resident(a) for a in inputs[2:]]

    kernel = functools.partial(block_kernel, n_head=n_head, eps=eps)

    x_out = pl.pallas_call(
        kernel,
        out_shape=jax.ShapeDtypeStruct((B, T, C), f32),
        grid=(num_steps,),
        in_specs=in_specs,
        out_specs=pl.BlockSpec((bb, T, C), lambda s: (s, 0, 0)),
        compiler_params=pltpu.CompilerParams(
            dimension_semantics=("parallel",)),
    )(*inputs)
    return x_out, context


def _reference(x, context, params, *, n_head,
               causal_self=True, causal_cross=False, eps=1e-5):
    """Pure-JAX f32 mirror of the PyTorch Block forward (dropout=0, tanh GELU)."""
    p = params
    B, T, C = x.shape
    D = C // n_head
    hp = jax.lax.Precision.HIGHEST

    def ln(h, g, b):
        mu = h.mean(-1, keepdims=True)
        var = ((h - mu) ** 2).mean(-1, keepdims=True)
        return (h - mu) / jnp.sqrt(var + eps) * g + b

    def lin(h, w, b):
        return jnp.einsum("btc,cn->btn", h, w, precision=hp) + b

    def split_heads(a):
        return a.reshape(B, -1, n_head, D).transpose(0, 2, 1, 3)

    def attn(q, k, v, causal):
        s = jnp.einsum("bhtd,bhsd->bhts", q, k, precision=hp) / (float(D) ** 0.5)
        if causal:
            tq, tk = s.shape[-2], s.shape[-1]
            keep = jnp.arange(tk)[None, :] <= jnp.arange(tq)[:, None]
            s = jnp.where(keep, s, -1e30)
        a = jax.nn.softmax(s, axis=-1)
        y = jnp.einsum("bhts,bhsd->bhtd", a, v, precision=hp)
        return y.transpose(0, 2, 1, 3).reshape(B, -1, C)

    def gelu(z):
        c = 0.7978845608028654
        return 0.5 * z * (1.0 + jnp.tanh(c * (z + 0.044715 * z ** 3)))

    h = ln(x, p["ln1_g"], p["ln1_b"])
    q = split_heads(lin(h, p["wq_s"], p["bq_s"]))
    k = split_heads(lin(h, p["wk_s"], p["bk_s"]))
    v = split_heads(lin(h, p["wv_s"], p["bv_s"]))
    x = x + lin(attn(q, k, v, causal_self), p["wo_s"], p["bo_s"])

    h = ln(x, p["ln2_g"], p["ln2_b"])
    q = split_heads(lin(h, p["wq_c"], p["bq_c"]))
    k = split_heads(lin(context, p["wk_c"], p["bk_c"]))
    v = split_heads(lin(context, p["wv_c"], p["bv_c"]))
    x = x + lin(attn(q, k, v, causal_cross), p["wo_c"], p["bo_c"])

    h = ln(x, p["ln2_g"], p["ln2_b"])
    x = x + lin(gelu(lin(h, p["w1"], p["b1"])), p["w2"], p["b2"])
    return x, context


if __name__ == "__main__":
    # Config: n_embd=32, n_head=4, block_size >= T=8, causal_attention=True,
    # causal_cross_attention=False, attn/resid dropout inactive (inference).
    B, T, Tc, C, H = 2, 8, 8, 32, 4
    keys = iter(jax.random.split(jax.random.PRNGKey(0), 28))

    def w(shape, scale=0.1):
        return scale * jax.random.normal(next(keys), shape, jnp.float32)

    params = dict(
        ln1_g=1.0 + 0.1 * jax.random.normal(next(keys), (C,), jnp.float32),
        ln1_b=0.05 * jax.random.normal(next(keys), (C,), jnp.float32),
        ln2_g=1.0 + 0.1 * jax.random.normal(next(keys), (C,), jnp.float32),
        ln2_b=0.05 * jax.random.normal(next(keys), (C,), jnp.float32),
        wq_s=w((C, C)), bq_s=w((C,)), wk_s=w((C, C)), bk_s=w((C,)),
        wv_s=w((C, C)), bv_s=w((C,)), wo_s=w((C, C)), bo_s=w((C,)),
        wq_c=w((C, C)), bq_c=w((C,)), wk_c=w((C, C)), bk_c=w((C,)),
        wv_c=w((C, C)), bv_c=w((C,)), wo_c=w((C, C)), bo_c=w((C,)),
        w1=w((C, 4 * C)), b1=w((4 * C,)), w2=w((4 * C, C)), b2=w((C,)),
    )
    x = jax.random.normal(next(keys), (B, T, C), jnp.float32)
    context = jax.random.normal(next(keys), (B, Tc, C), jnp.float32)

    ref_x, _ = _reference(x, context, params, n_head=H,
                          causal_self=True, causal_cross=False)

    # f32 MXU-operand path: tight numerical check.
    out_f32, out_ctx = transformer_block(x, context, params, n_head=H,
                                         causal_self=True, causal_cross=False,
                                         matmul_dtype=jnp.float32)
    out_f32 = jax.block_until_ready(out_f32)
    assert out_f32.shape == (B, T, C), out_f32.shape
    assert out_ctx.shape == (B, Tc, C), out_ctx.shape
    err32 = float(jnp.max(jnp.abs(out_f32 - ref_x)))
    assert jnp.allclose(out_f32, ref_x, rtol=2e-3, atol=5e-4), err32

    # bf16 MXU-operand path (recommended on v5e/v6e/v7x): looser check vs the
    # f32 reference (bf16 operand rounding, f32 accumulation).
    out_bf16, _ = transformer_block(x, context, params, n_head=H,
                                    causal_self=True, causal_cross=False,
                                    matmul_dtype=jnp.bfloat16)
    out_bf16 = jax.block_until_ready(out_bf16)
    err16 = float(jnp.max(jnp.abs(out_bf16 - ref_x)))
    assert jnp.allclose(out_bf16, ref_x, rtol=5e-2, atol=5e-2), err16

    print("KERNEL_OK")
</pallas_src>

<mosaic_0001>
module attributes {stable_mosaic.version = 11 : i64} {
  func.func @block_kernel(%arg0: i32, %arg1: memref<2x8x32xf32, #tpu.memory_space<vmem>>, %arg2: memref<2x8x32xf32, #tpu.memory_space<vmem>>, %arg3: memref<64x64xf32, #tpu.memory_space<vmem>>, %arg4: memref<64x64xf32, #tpu.memory_space<vmem>>, %arg5: memref<1x32xf32, #tpu.memory_space<vmem>>, %arg6: memref<1x32xf32, #tpu.memory_space<vmem>>, %arg7: memref<1x32xf32, #tpu.memory_space<vmem>>, %arg8: memref<1x32xf32, #tpu.memory_space<vmem>>, %arg9: memref<32x96xf32, #tpu.memory_space<vmem>>, %arg10: memref<1x96xf32, #tpu.memory_space<vmem>>, %arg11: memref<32x32xf32, #tpu.memory_space<vmem>>, %arg12: memref<1x32xf32, #tpu.memory_space<vmem>>, %arg13: memref<32x32xf32, #tpu.memory_space<vmem>>, %arg14: memref<1x32xf32, #tpu.memory_space<vmem>>, %arg15: memref<32x64xf32, #tpu.memory_space<vmem>>, %arg16: memref<1x64xf32, #tpu.memory_space<vmem>>, %arg17: memref<32x32xf32, #tpu.memory_space<vmem>>, %arg18: memref<1x32xf32, #tpu.memory_space<vmem>>, %arg19: memref<32x128xf32, #tpu.memory_space<vmem>>, %arg20: memref<1x128xf32, #tpu.memory_space<vmem>>, %arg21: memref<128x32xf32, #tpu.memory_space<vmem>>, %arg22: memref<1x32xf32, #tpu.memory_space<vmem>>, %arg23: memref<2x8x32xf32, #tpu.memory_space<vmem>>) attributes {dimension_semantics = [#tpu.dimension_semantics<parallel>], iteration_bounds = array<i64: 1>, scalar_prefetch = 0 : i64, scratch_operands = 0 : i64, tpu.core_type = #tpu.core_type<tc>, window_params = [{transform_indices = @transform_0, window_bounds = array<i64: 2, 8, 32>}, {transform_indices = @transform_1, window_bounds = array<i64: 2, 8, 32>}, {pipeline_mode = #tpu.pipeline_mode<synchronous>, transform_indices = @transform_2, window_bounds = array<i64: 64, 64>}, {pipeline_mode = #tpu.pipeline_mode<synchronous>, transform_indices = @transform_3, window_bounds = array<i64: 64, 64>}, {pipeline_mode = #tpu.pipeline_mode<synchronous>, transform_indices = @transform_4, window_bounds = array<i64: 1, 32>}, {pipeline_mode = #tpu.pipeline_mode<synchronous>, transform_indices = @transform_5, window_bounds = array<i64: 1, 32>}, {pipeline_mode = #tpu.pipeline_mode<synchronous>, transform_indices = @transform_6, window_bounds = array<i64: 1, 32>}, {pipeline_mode = #tpu.pipeline_mode<synchronous>, transform_indices = @transform_7, window_bounds = array<i64: 1, 32>}, {pipeline_mode = #tpu.pipeline_mode<synchronous>, transform_indices = @transform_8, window_bounds = array<i64: 32, 96>}, {pipeline_mode = #tpu.pipeline_mode<synchronous>, transform_indices = @transform_9, window_bounds = array<i64: 1, 96>}, {pipeline_mode = #tpu.pipeline_mode<synchronous>, transform_indices = @transform_10, window_bounds = array<i64: 32, 32>}, {pipeline_mode = #tpu.pipeline_mode<synchronous>, transform_indices = @transform_11, window_bounds = array<i64: 1, 32>}, {pipeline_mode = #tpu.pipeline_mode<synchronous>, transform_indices = @transform_12, window_bounds = array<i64: 32, 32>}, {pipeline_mode = #tpu.pipeline_mode<synchronous>, transform_indices = @transform_13, window_bounds = array<i64: 1, 32>}, {pipeline_mode = #tpu.pipeline_mode<synchronous>, transform_indices = @transform_14, window_bounds = array<i64: 32, 64>}, {pipeline_mode = #tpu.pipeline_mode<synchronous>, transform_indices = @transform_15, window_bounds = array<i64: 1, 64>}, {pipeline_mode = #tpu.pipeline_mode<synchronous>, transform_indices = @transform_16, window_bounds = array<i64: 32, 32>}, {pipeline_mode = #tpu.pipeline_mode<synchronous>, transform_indices = @transform_17, window_bounds = array<i64: 1, 32>}, {pipeline_mode = #tpu.pipeline_mode<synchronous>, transform_indices = @transform_18, window_bounds = array<i64: 32, 128>}, {pipeline_mode = #tpu.pipeline_mode<synchronous>, transform_indices = @transform_19, window_bounds = array<i64: 1, 128>}, {pipeline_mode = #tpu.pipeline_mode<synchronous>, transform_indices = @transform_20, window_bounds = array<i64: 128, 32>}, {pipeline_mode = #tpu.pipeline_mode<synchronous>, transform_indices = @transform_21, window_bounds = array<i64: 1, 32>}, {transform_indices = @transform_22, window_bounds = array<i64: 2, 8, 32>}]} {
    %c0 = arith.constant 0 : index
    %c0_0 = arith.constant 0 : index
    %c0_1 = arith.constant 0 : index
    %0 = vector.load %arg1[%c0, %c0_0, %c0_1] : memref<2x8x32xf32, #tpu.memory_space<vmem>>, vector<2x8x32xf32>
    %1 = vector.shape_cast %0 : vector<2x8x32xf32> to vector<16x32xf32>
    %c0_2 = arith.constant 0 : index
    %c0_3 = arith.constant 0 : index
    %c0_4 = arith.constant 0 : index
    %2 = vector.load %arg2[%c0_2, %c0_3, %c0_4] : memref<2x8x32xf32, #tpu.memory_space<vmem>>, vector<2x8x32xf32>
    %3 = vector.shape_cast %2 : vector<2x8x32xf32> to vector<16x32xf32>
    %c0_5 = arith.constant 0 : index
    %c0_6 = arith.constant 0 : index
    %4 = vector.load %arg5[%c0_5, %c0_6] : memref<1x32xf32, #tpu.memory_space<vmem>>, vector<1x32xf32>
    %c0_7 = arith.constant 0 : index
    %c0_8 = arith.constant 0 : index
    %5 = vector.load %arg6[%c0_7, %c0_8] : memref<1x32xf32, #tpu.memory_space<vmem>>, vector<1x32xf32>
    %cst = arith.constant dense<0.000000e+00> : vector<16xf32>
    %6 = vector.multi_reduction <add>, %1, %cst [1] : vector<16x32xf32> to vector<16xf32>
    %7 = vector.shape_cast %6 : vector<16xf32> to vector<16x1xf32>
    %cst_9 = arith.constant 3.200000e+01 : f32
    %8 = vector.broadcast %cst_9 : f32 to vector<16x1xf32>
    %9 = arith.divf %7, %8 : vector<16x1xf32>
    %10 = vector.broadcast %9 : vector<16x1xf32> to vector<16x32xf32>
    %11 = arith.subf %1, %10 : vector<16x32xf32>
    %12 = arith.mulf %11, %11 : vector<16x32xf32>
    %cst_10 = arith.constant dense<0.000000e+00> : vector<16xf32>
    %13 = vector.multi_reduction <add>, %12, %cst_10 [1] : vector<16x32xf32> to vector<16xf32>
    %14 = vector.shape_cast %13 : vector<16xf32> to vector<16x1xf32>
    %cst_11 = arith.constant 3.200000e+01 : f32
    %15 = vector.broadcast %cst_11 : f32 to vector<16x1xf32>
    %16 = arith.divf %14, %15 : vector<16x1xf32>
    %17 = vector.broadcast %9 : vector<16x1xf32> to vector<16x32xf32>
    %18 = arith.subf %1, %17 : vector<16x32xf32>
    %cst_12 = arith.constant 9.99999974E-6 : f32
    %19 = vector.broadcast %cst_12 : f32 to vector<16x1xf32>
    %20 = arith.addf %16, %19 : vector<16x1xf32>
    %21 = math.rsqrt %20 : vector<16x1xf32>
    %22 = vector.broadcast %21 : vector<16x1xf32> to vector<16x32xf32>
    %23 = arith.mulf %18, %22 : vector<16x32xf32>
    %24 = vector.broadcast %4 : vector<1x32xf32> to vector<16x32xf32>
    %25 = arith.mulf %23, %24 : vector<16x32xf32>
    %26 = vector.broadcast %5 : vector<1x32xf32> to vector<16x32xf32>
    %27 = arith.addf %25, %26 : vector<16x32xf32>
    %c0_13 = arith.constant 0 : index
    %c0_14 = arith.constant 0 : index
    %28 = vector.load %arg9[%c0_13, %c0_14] : memref<32x96xf32, #tpu.memory_space<vmem>>, vector<32x96xf32>
    %cst_15 = arith.constant dense<0.000000e+00> : vector<16x96xf32>
    %29 = tpu.matmul %27, %28, %cst_15 {dimension_numbers = #tpu.dot_dimension_numbers<[1], [0], [0], [1], [0, 0, 1, 1], [], []>} : vector<16x32xf32>, vector<32x96xf32>, vector<16x96xf32> -> vector<16x96xf32>
    %c0_16 = arith.constant 0 : index
    %c0_17 = arith.constant 0 : index
    %30 = vector.load %arg10[%c0_16, %c0_17] : memref<1x96xf32, #tpu.memory_space<vmem>>, vector<1x96xf32>
    %31 = vector.broadcast %30 : vector<1x96xf32> to vector<16x96xf32>
    %32 = arith.addf %29, %31 : vector<16x96xf32>
    %33 = vector.extract_strided_slice %32 {offsets = [0, 0], sizes = [16, 32], strides = [1, 1]} : vector<16x96xf32> to vector<16x32xf32>
    %34 = vector.extract_strided_slice %32 {offsets = [0, 32], sizes = [16, 32], strides = [1, 1]} : vector<16x96xf32> to vector<16x32xf32>
    %35 = vector.extract_strided_slice %32 {offsets = [0, 64], sizes = [16, 32], strides = [1, 1]} : vector<16x96xf32> to vector<16x32xf32>
    %c0_18 = arith.constant 0 : index
    %c0_19 = arith.constant 0 : index
    %36 = vector.load %arg3[%c0_18, %c0_19] : memref<64x64xf32, #tpu.memory_space<vmem>>, vector<64x64xf32>
    %37 = vector.extract_strided_slice %33 {offsets = [0, 0], sizes = [16, 8], strides = [1, 1]} : vector<16x32xf32> to vector<16x8xf32>
    %38 = vector.extract_strided_slice %33 {offsets = [0, 8], sizes = [16, 8], strides = [1, 1]} : vector<16x32xf32> to vector<16x8xf32>
    %39 = vector.extract_strided_slice %33 {offsets = [0, 16], sizes = [16, 8], strides = [1, 1]} : vector<16x32xf32> to vector<16x8xf32>
    %40 = vector.extract_strided_slice %33 {offsets = [0, 24], sizes = [16, 8], strides = [1, 1]} : vector<16x32xf32> to vector<16x8xf32>
    %41 = tpu.concatenate %37, %38, %39, %40 in 0 : vector<16x8xf32>, vector<16x8xf32>, vector<16x8xf32>, vector<16x8xf32> -> vector<64x8xf32>
    %42 = vector.extract_strided_slice %34 {offsets = [0, 0], sizes = [16, 8], strides = [1, 1]} : vector<16x32xf32> to vector<16x8xf32>
    %43 = vector.extract_strided_slice %34 {offsets = [0, 8], sizes = [16, 8], strides = [1, 1]} : vector<16x32xf32> to vector<16x8xf32>
    %44 = vector.extract_strided_slice %34 {offsets = [0, 16], sizes = [16, 8], strides = [1, 1]} : vector<16x32xf32> to vector<16x8xf32>
    %45 = vector.extract_strided_slice %34 {offsets = [0, 24], sizes = [16, 8], strides = [1, 1]} : vector<16x32xf32> to vector<16x8xf32>
    %46 = tpu.concatenate %42, %43, %44, %45 in 0 : vector<16x8xf32>, vector<16x8xf32>, vector<16x8xf32>, vector<16x8xf32> -> vector<64x8xf32>
    %47 = vector.extract_strided_slice %35 {offsets = [0, 0], sizes = [16, 8], strides = [1, 1]} : vector<16x32xf32> to vector<16x8xf32>
    %48 = vector.extract_strided_slice %35 {offsets = [0, 8], sizes = [16, 8], strides = [1, 1]} : vector<16x32xf32> to vector<16x8xf32>
    %49 = vector.extract_strided_slice %35 {offsets = [0, 16], sizes = [16, 8], strides = [1, 1]} : vector<16x32xf32> to vector<16x8xf32>
    %50 = vector.extract_strided_slice %35 {offsets = [0, 24], sizes = [16, 8], strides = [1, 1]} : vector<16x32xf32> to vector<16x8xf32>
    %51 = tpu.concatenate %47, %48, %49, %50 in 0 : vector<16x8xf32>, vector<16x8xf32>, vector<16x8xf32>, vector<16x8xf32> -> vector<64x8xf32>
    %cst_20 = arith.constant dense<0.000000e+00> : vector<64x64xf32>
    %52 = tpu.matmul %41, %46, %cst_20 {dimension_numbers = #tpu.dot_dimension_numbers<[1], [1], [0], [0], [0, 0, 1, 0], [], []>} : vector<64x8xf32>, vector<64x8xf32>, vector<64x64xf32> -> vector<64x64xf32>
    %53 = arith.addf %52, %36 : vector<64x64xf32>
    %cst_21 = arith.constant dense<0xFF800000> : vector<64xf32>
    %54 = vector.multi_reduction <maximumf>, %53, %cst_21 [1] : vector<64x64xf32> to vector<64xf32>
    %55 = vector.shape_cast %54 : vector<64xf32> to vector<64x1xf32>
    %56 = vector.broadcast %55 : vector<64x1xf32> to vector<64x64xf32>
    %57 = arith.subf %53, %56 : vector<64x64xf32>
    %58 = math.exp %57 : vector<64x64xf32>
    %cst_22 = arith.constant dense<0.000000e+00> : vector<64xf32>
    %59 = vector.multi_reduction <add>, %58, %cst_22 [1] : vector<64x64xf32> to vector<64xf32>
    %60 = vector.shape_cast %59 : vector<64xf32> to vector<64x1xf32>
    %61 = vector.broadcast %60 : vector<64x1xf32> to vector<64x64xf32>
    %62 = arith.divf %58, %61 : vector<64x64xf32>
    %cst_23 = arith.constant dense<0.000000e+00> : vector<64x8xf32>
    %63 = tpu.matmul %62, %51, %cst_23 {dimension_numbers = #tpu.dot_dimension_numbers<[1], [0], [0], [1], [0, 0, 1, 1], [], []>} : vector<64x64xf32>, vector<64x8xf32>, vector<64x8xf32> -> vector<64x8xf32>
    %64 = vector.extract_strided_slice %63 {offsets = [0, 0], sizes = [16, 8], strides = [1, 1]} : vector<64x8xf32> to vector<16x8xf32>
    %65 = vector.extract_strided_slice %63 {offsets = [16, 0], sizes = [16, 8], strides = [1, 1]} : vector<64x8xf32> to vector<16x8xf32>
    %66 = vector.extract_strided_slice %63 {offsets = [32, 0], sizes = [16, 8], strides = [1, 1]} : vector<64x8xf32> to vector<16x8xf32>
    %67 = vector.extract_strided_slice %63 {offsets = [48, 0], sizes = [16, 8], strides = [1, 1]} : vector<64x8xf32> to vector<16x8xf32>
    %68 = tpu.concatenate %64, %65, %66, %67 in 1 : vector<16x8xf32>, vector<16x8xf32>, vector<16x8xf32>, vector<16x8xf32> -> vector<16x32xf32>
    %c0_24 = arith.constant 0 : index
    %c0_25 = arith.constant 0 : index
    %69 = vector.load %arg11[%c0_24, %c0_25] : memref<32x32xf32, #tpu.memory_space<vmem>>, vector<32x32xf32>
    %cst_26 = arith.constant dense<0.000000e+00> : vector<16x32xf32>
    %70 = tpu.matmul %68, %69, %cst_26 {dimension_numbers = #tpu.dot_dimension_numbers<[1], [0], [0], [1], [0, 0, 1, 1], [], []>} : vector<16x32xf32>, vector<32x32xf32>, vector<16x32xf32> -> vector<16x32xf32>
    %c0_27 = arith.constant 0 : index
    %c0_28 = arith.constant 0 : index
    %71 = vector.load %arg12[%c0_27, %c0_28] : memref<1x32xf32, #tpu.memory_space<vmem>>, vector<1x32xf32>
    %72 = vector.broadcast %71 : vector<1x32xf32> to vector<16x32xf32>
    %73 = arith.addf %70, %72 : vector<16x32xf32>
    %74 = arith.addf %1, %73 : vector<16x32xf32>
    %c0_29 = arith.constant 0 : index
    %c0_30 = arith.constant 0 : index
    %75 = vector.load %arg7[%c0_29, %c0_30] : memref<1x32xf32, #tpu.memory_space<vmem>>, vector<1x32xf32>
    %c0_31 = arith.constant 0 : index
    %c0_32 = arith.constant 0 : index
    %76 = vector.load %arg8[%c0_31, %c0_32] : memref<1x32xf32, #tpu.memory_space<vmem>>, vector<1x32xf32>
    %cst_33 = arith.constant dense<0.000000e+00> : vector<16xf32>
    %77 = vector.multi_reduction <add>, %74, %cst_33 [1] : vector<16x32xf32> to vector<16xf32>
    %78 = vector.shape_cast %77 : vector<16xf32> to vector<16x1xf32>
    %cst_34 = arith.constant 3.200000e+01 : f32
    %79 = vector.broadcast %cst_34 : f32 to vector<16x1xf32>
    %80 = arith.divf %78, %79 : vector<16x1xf32>
    %81 = vector.broadcast %80 : vector<16x1xf32> to vector<16x32xf32>
    %82 = arith.subf %74, %81 : vector<16x32xf32>
    %83 = arith.mulf %82, %82 : vector<16x32xf32>
    %cst_35 = arith.constant dense<0.000000e+00> : vector<16xf32>
    %84 = vector.multi_reduction <add>, %83, %cst_35 [1] : vector<16x32xf32> to vector<16xf32>
    %85 = vector.shape_cast %84 : vector<16xf32> to vector<16x1xf32>
    %cst_36 = arith.constant 3.200000e+01 : f32
    %86 = vector.broadcast %cst_36 : f32 to vector<16x1xf32>
    %87 = arith.divf %85, %86 : vector<16x1xf32>
    %88 = vector.broadcast %80 : vector<16x1xf32> to vector<16x32xf32>
    %89 = arith.subf %74, %88 : vector<16x32xf32>
    %cst_37 = arith.constant 9.99999974E-6 : f32
    %90 = vector.broadcast %cst_37 : f32 to vector<16x1xf32>
    %91 = arith.addf %87, %90 : vector<16x1xf32>
    %92 = math.rsqrt %91 : vector<16x1xf32>
    %93 = vector.broadcast %92 : vector<16x1xf32> to vector<16x32xf32>
    %94 = arith.mulf %89, %93 : vector<16x32xf32>
    %95 = vector.broadcast %75 : vector<1x32xf32> to vector<16x32xf32>
    %96 = arith.mulf %94, %95 : vector<16x32xf32>
    %97 = vector.broadcast %76 : vector<1x32xf32> to vector<16x32xf32>
    %98 = arith.addf %96, %97 : vector<16x32xf32>
    %c0_38 = arith.constant 0 : index
    %c0_39 = arith.constant 0 : index
    %99 = vector.load %arg13[%c0_38, %c0_39] : memref<32x32xf32, #tpu.memory_space<vmem>>, vector<32x32xf32>
    %cst_40 = arith.constant dense<0.000000e+00> : vector<16x32xf32>
    %100 = tpu.matmul %98, %99, %cst_40 {dimension_numbers = #tpu.dot_dimension_numbers<[1], [0], [0], [1], [0, 0, 1, 1], [], []>} : vector<16x32xf32>, vector<32x32xf32>, vector<16x32xf32> -> vector<16x32xf32>
    %c0_41 = arith.constant 0 : index
    %c0_42 = arith.constant 0 : index
    %101 = vector.load %arg14[%c0_41, %c0_42] : memref<1x32xf32, #tpu.memory_space<vmem>>, vector<1x32xf32>
    %102 = vector.broadcast %101 : vector<1x32xf32> to vector<16x32xf32>
    %103 = arith.addf %100, %102 : vector<16x32xf32>
    %c0_43 = arith.constant 0 : index
    %c0_44 = arith.constant 0 : index
    %104 = vector.load %arg15[%c0_43, %c0_44] : memref<32x64xf32, #tpu.memory_space<vmem>>, vector<32x64xf32>
    %cst_45 = arith.constant dense<0.000000e+00> : vector<16x64xf32>
    %105 = tpu.matmul %3, %104, %cst_45 {dimension_numbers = #tpu.dot_dimension_numbers<[1], [0], [0], [1], [0, 0, 1, 1], [], []>} : vector<16x32xf32>, vector<32x64xf32>, vector<16x64xf32> -> vector<16x64xf32>
    %c0_46 = arith.constant 0 : index
    %c0_47 = arith.constant 0 : index
    %106 = vector.load %arg16[%c0_46, %c0_47] : memref<1x64xf32, #tpu.memory_space<vmem>>, vector<1x64xf32>
    %107 = vector.broadcast %106 : vector<1x64xf32> to vector<16x64xf32>
    %108 = arith.addf %105, %107 : vector<16x64xf32>
    %109 = vector.extract_strided_slice %108 {offsets = [0, 0], sizes = [16, 32], strides = [1, 1]} : vector<16x64xf32> to vector<16x32xf32>
    %110 = vector.extract_strided_slice %108 {offsets = [0, 32], sizes = [16, 32], strides = [1, 1]} : vector<16x64xf32> to vector<16x32xf32>
    %c0_48 = arith.constant 0 : index
    %c0_49 = arith.constant 0 : index
    %111 = vector.load %arg4[%c0_48, %c0_49] : memref<64x64xf32, #tpu.memory_space<vmem>>, vector<64x64xf32>
    %112 = vector.extract_strided_slice %103 {offsets = [0, 0], sizes = [16, 8], strides = [1, 1]} : vector<16x32xf32> to vector<16x8xf32>
    %113 = vector.extract_strided_slice %103 {offsets = [0, 8], sizes = [16, 8], strides = [1, 1]} : vector<16x32xf32> to vector<16x8xf32>
    %114 = vector.extract_strided_slice %103 {offsets = [0, 16], sizes = [16, 8], strides = [1, 1]} : vector<16x32xf32> to vector<16x8xf32>
    %115 = vector.extract_strided_slice %103 {offsets = [0, 24], sizes = [16, 8], strides = [1, 1]} : vector<16x32xf32> to vector<16x8xf32>
    %116 = tpu.concatenate %112, %113, %114, %115 in 0 : vector<16x8xf32>, vector<16x8xf32>, vector<16x8xf32>, vector<16x8xf32> -> vector<64x8xf32>
    %117 = vector.extract_strided_slice %109 {offsets = [0, 0], sizes = [16, 8], strides = [1, 1]} : vector<16x32xf32> to vector<16x8xf32>
    %118 = vector.extract_strided_slice %109 {offsets = [0, 8], sizes = [16, 8], strides = [1, 1]} : vector<16x32xf32> to vector<16x8xf32>
    %119 = vector.extract_strided_slice %109 {offsets = [0, 16], sizes = [16, 8], strides = [1, 1]} : vector<16x32xf32> to vector<16x8xf32>
    %120 = vector.extract_strided_slice %109 {offsets = [0, 24], sizes = [16, 8], strides = [1, 1]} : vector<16x32xf32> to vector<16x8xf32>
    %121 = tpu.concatenate %117, %118, %119, %120 in 0 : vector<16x8xf32>, vector<16x8xf32>, vector<16x8xf32>, vector<16x8xf32> -> vector<64x8xf32>
    %122 = vector.extract_strided_slice %110 {offsets = [0, 0], sizes = [16, 8], strides = [1, 1]} : vector<16x32xf32> to vector<16x8xf32>
    %123 = vector.extract_strided_slice %110 {offsets = [0, 8], sizes = [16, 8], strides = [1, 1]} : vector<16x32xf32> to vector<16x8xf32>
    %124 = vector.extract_strided_slice %110 {offsets = [0, 16], sizes = [16, 8], strides = [1, 1]} : vector<16x32xf32> to vector<16x8xf32>
    %125 = vector.extract_strided_slice %110 {offsets = [0, 24], sizes = [16, 8], strides = [1, 1]} : vector<16x32xf32> to vector<16x8xf32>
    %126 = tpu.concatenate %122, %123, %124, %125 in 0 : vector<16x8xf32>, vector<16x8xf32>, vector<16x8xf32>, vector<16x8xf32> -> vector<64x8xf32>
    %cst_50 = arith.constant dense<0.000000e+00> : vector<64x64xf32>
    %127 = tpu.matmul %116, %121, %cst_50 {dimension_numbers = #tpu.dot_dimension_numbers<[1], [1], [0], [0], [0, 0, 1, 0], [], []>} : vector<64x8xf32>, vector<64x8xf32>, vector<64x64xf32> -> vector<64x64xf32>
    %128 = arith.addf %127, %111 : vector<64x64xf32>
    %cst_51 = arith.constant dense<0xFF800000> : vector<64xf32>
    %129 = vector.multi_reduction <maximumf>, %128, %cst_51 [1] : vector<64x64xf32> to vector<64xf32>
    %130 = vector.shape_cast %129 : vector<64xf32> to vector<64x1xf32>
    %131 = vector.broadcast %130 : vector<64x1xf32> to vector<64x64xf32>
    %132 = arith.subf %128, %131 : vector<64x64xf32>
    %133 = math.exp %132 : vector<64x64xf32>
    %cst_52 = arith.constant dense<0.000000e+00> : vector<64xf32>
    %134 = vector.multi_reduction <add>, %133, %cst_52 [1] : vector<64x64xf32> to vector<64xf32>
    %135 = vector.shape_cast %134 : vector<64xf32> to vector<64x1xf32>
    %136 = vector.broadcast %135 : vector<64x1xf32> to vector<64x64xf32>
    %137 = arith.divf %133, %136 : vector<64x64xf32>
    %cst_53 = arith.constant dense<0.000000e+00> : vector<64x8xf32>
    %138 = tpu.matmul %137, %126, %cst_53 {dimension_numbers = #tpu.dot_dimension_numbers<[1], [0], [0], [1], [0, 0, 1, 1], [], []>} : vector<64x64xf32>, vector<64x8xf32>, vector<64x8xf32> -> vector<64x8xf32>
    %139 = vector.extract_strided_slice %138 {offsets = [0, 0], sizes = [16, 8], strides = [1, 1]} : vector<64x8xf32> to vector<16x8xf32>
    %140 = vector.extract_strided_slice %138 {offsets = [16, 0], sizes = [16, 8], strides = [1, 1]} : vector<64x8xf32> to vector<16x8xf32>
    %141 = vector.extract_strided_slice %138 {offsets = [32, 0], sizes = [16, 8], strides = [1, 1]} : vector<64x8xf32> to vector<16x8xf32>
    %142 = vector.extract_strided_slice %138 {offsets = [48, 0], sizes = [16, 8], strides = [1, 1]} : vector<64x8xf32> to vector<16x8xf32>
    %143 = tpu.concatenate %139, %140, %141, %142 in 1 : vector<16x8xf32>, vector<16x8xf32>, vector<16x8xf32>, vector<16x8xf32> -> vector<16x32xf32>
    %c0_54 = arith.constant 0 : index
    %c0_55 = arith.constant 0 : index
    %144 = vector.load %arg17[%c0_54, %c0_55] : memref<32x32xf32, #tpu.memory_space<vmem>>, vector<32x32xf32>
    %cst_56 = arith.constant dense<0.000000e+00> : vector<16x32xf32>
    %145 = tpu.matmul %143, %144, %cst_56 {dimension_numbers = #tpu.dot_dimension_numbers<[1], [0], [0], [1], [0, 0, 1, 1], [], []>} : vector<16x32xf32>, vector<32x32xf32>, vector<16x32xf32> -> vector<16x32xf32>
    %c0_57 = arith.constant 0 : index
    %c0_58 = arith.constant 0 : index
    %146 = vector.load %arg18[%c0_57, %c0_58] : memref<1x32xf32, #tpu.memory_space<vmem>>, vector<1x32xf32>
    %147 = vector.broadcast %146 : vector<1x32xf32> to vector<16x32xf32>
    %148 = arith.addf %145, %147 : vector<16x32xf32>
    %149 = arith.addf %74, %148 : vector<16x32xf32>
    %c0_59 = arith.constant 0 : index
    %c0_60 = arith.constant 0 : index
    %150 = vector.load %arg7[%c0_59, %c0_60] : memref<1x32xf32, #tpu.memory_space<vmem>>, vector<1x32xf32>
    %c0_61 = arith.constant 0 : index
    %c0_62 = arith.constant 0 : index
    %151 = vector.load %arg8[%c0_61, %c0_62] : memref<1x32xf32, #tpu.memory_space<vmem>>, vector<1x32xf32>
    %cst_63 = arith.constant dense<0.000000e+00> : vector<16xf32>
    %152 = vector.multi_reduction <add>, %149, %cst_63 [1] : vector<16x32xf32> to vector<16xf32>
    %153 = vector.shape_cast %152 : vector<16xf32> to vector<16x1xf32>
    %cst_64 = arith.constant 3.200000e+01 : f32
    %154 = vector.broadcast %cst_64 : f32 to vector<16x1xf32>
    %155 = arith.divf %153, %154 : vector<16x1xf32>
    %156 = vector.broadcast %155 : vector<16x1xf32> to vector<16x32xf32>
    %157 = arith.subf %149, %156 : vector<16x32xf32>
    %158 = arith.mulf %157, %157 : vector<16x32xf32>
    %cst_65 = arith.constant dense<0.000000e+00> : vector<16xf32>
    %159 = vector.multi_reduction <add>, %158, %cst_65 [1] : vector<16x32xf32> to vector<16xf32>
    %160 = vector.shape_cast %159 : vector<16xf32> to vector<16x1xf32>
    %cst_66 = arith.constant 3.200000e+01 : f32
    %161 = vector.broadcast %cst_66 : f32 to vector<16x1xf32>
    %162 = arith.divf %160, %161 : vector<16x1xf32>
    %163 = vector.broadcast %155 : vector<16x1xf32> to vector<16x32xf32>
    %164 = arith.subf %149, %163 : vector<16x32xf32>
    %cst_67 = arith.constant 9.99999974E-6 : f32
    %165 = vector.broadcast %cst_67 : f32 to vector<16x1xf32>
    %166 = arith.addf %162, %165 : vector<16x1xf32>
    %167 = math.rsqrt %166 : vector<16x1xf32>
    %168 = vector.broadcast %167 : vector<16x1xf32> to vector<16x32xf32>
    %169 = arith.mulf %164, %168 : vector<16x32xf32>
    %170 = vector.broadcast %150 : vector<1x32xf32> to vector<16x32xf32>
    %171 = arith.mulf %169, %170 : vector<16x32xf32>
    %172 = vector.broadcast %151 : vector<1x32xf32> to vector<16x32xf32>
    %173 = arith.addf %171, %172 : vector<16x32xf32>
    %c0_68 = arith.constant 0 : index
    %c0_69 = arith.constant 0 : index
    %174 = vector.load %arg19[%c0_68, %c0_69] : memref<32x128xf32, #tpu.memory_space<vmem>>, vector<32x128xf32>
    %cst_70 = arith.constant dense<0.000000e+00> : vector<16x128xf32>
    %175 = tpu.matmul %173, %174, %cst_70 {dimension_numbers = #tpu.dot_dimension_numbers<[1], [0], [0], [1], [0, 0, 1, 1], [], []>} : vector<16x32xf32>, vector<32x128xf32>, vector<16x128xf32> -> vector<16x128xf32>
    %c0_71 = arith.constant 0 : index
    %c0_72 = arith.constant 0 : index
    %176 = vector.load %arg20[%c0_71, %c0_72] : memref<1x128xf32, #tpu.memory_space<vmem>>, vector<1x128xf32>
    %177 = vector.broadcast %176 : vector<1x128xf32> to vector<16x128xf32>
    %178 = arith.addf %175, %177 : vector<16x128xf32>
    %cst_73 = arith.constant 5.000000e-01 : f32
    %179 = vector.broadcast %cst_73 : f32 to vector<16x128xf32>
    %180 = arith.mulf %179, %178 : vector<16x128xf32>
    %cst_74 = arith.constant 4.471500e-02 : f32
    %181 = vector.broadcast %cst_74 : f32 to vector<16x128xf32>
    %182 = arith.mulf %181, %178 : vector<16x128xf32>
    %183 = arith.mulf %182, %178 : vector<16x128xf32>
    %184 = arith.mulf %183, %178 : vector<16x128xf32>
    %185 = arith.addf %178, %184 : vector<16x128xf32>
    %cst_75 = arith.constant 0.797884583 : f32
    %186 = vector.broadcast %cst_75 : f32 to vector<16x128xf32>
    %187 = arith.mulf %186, %185 : vector<16x128xf32>
    %188 = math.tanh %187 : vector<16x128xf32>
    %cst_76 = arith.constant 1.000000e+00 : f32
    %189 = vector.broadcast %cst_76 : f32 to vector<16x128xf32>
    %190 = arith.addf %189, %188 : vector<16x128xf32>
    %191 = arith.mulf %180, %190 : vector<16x128xf32>
    %c0_77 = arith.constant 0 : index
    %c0_78 = arith.constant 0 : index
    %192 = vector.load %arg21[%c0_77, %c0_78] : memref<128x32xf32, #tpu.memory_space<vmem>>, vector<128x32xf32>
    %cst_79 = arith.constant dense<0.000000e+00> : vector<16x32xf32>
    %193 = tpu.matmul %191, %192, %cst_79 {dimension_numbers = #tpu.dot_dimension_numbers<[1], [0], [0], [1], [0, 0, 1, 1], [], []>} : vector<16x128xf32>, vector<128x32xf32>, vector<16x32xf32> -> vector<16x32xf32>
    %c0_80 = arith.constant 0 : index
    %c0_81 = arith.constant 0 : index
    %194 = vector.load %arg22[%c0_80, %c0_81] : memref<1x32xf32, #tpu.memory_space<vmem>>, vector<1x32xf32>
    %195 = vector.broadcast %194 : vector<1x32xf32> to vector<16x32xf32>
    %196 = arith.addf %193, %195 : vector<16x32xf32>
    %197 = arith.addf %149, %196 : vector<16x32xf32>
    %198 = vector.shape_cast %197 : vector<16x32xf32> to vector<2x8x32xf32>
    %c0_82 = arith.constant 0 : index
    %c0_83 = arith.constant 0 : index
    %c0_84 = arith.constant 0 : index
    %199 = vector.load %arg23[%c0_82, %c0_83, %c0_84] : memref<2x8x32xf32, #tpu.memory_space<vmem>>, vector<2x8x32xf32>
    tpu.vector_store %arg23[%c0_82, %c0_83, %c0_84], %198 {strides = array<i32>} : memref<2x8x32xf32, #tpu.memory_space<vmem>>, vector<2x8x32xf32>,
    return
  }
  func.func @transform_0(%arg0: i32) -> (i32, i32, i32) {
    %c0_i32 = arith.constant 0 : i32
    %c0_i32_0 = arith.constant 0 : i32
    %c0_i32_1 = arith.constant 0 : i32
    return %arg0, %c0_i32, %c0_i32_0 : i32, i32, i32
  }
  func.func @transform_1(%arg0: i32) -> (i32, i32, i32) {
    %c0_i32 = arith.constant 0 : i32
    %c0_i32_0 = arith.constant 0 : i32
    %c0_i32_1 = arith.constant 0 : i32
    return %arg0, %c0_i32, %c0_i32_0 : i32, i32, i32
  }
  func.func @transform_2(%arg0: i32) -> (i32, i32) {
    %c0_i32 = arith.constant 0 : i32
    %c0_i32_0 = arith.constant 0 : i32
    %c0_i32_1 = arith.constant 0 : i32
    return %c0_i32, %c0_i32_0 : i32, i32
  }
  func.func @transform_3(%arg0: i32) -> (i32, i32) {
    %c0_i32 = arith.constant 0 : i32
    %c0_i32_0 = arith.constant 0 : i32
    %c0_i32_1 = arith.constant 0 : i32
    return %c0_i32, %c0_i32_0 : i32, i32
  }
  func.func @transform_4(%arg0: i32) -> (i32, i32) {
    %c0_i32 = arith.constant 0 : i32
    %c0_i32_0 = arith.constant 0 : i32
    %c0_i32_1 = arith.constant 0 : i32
    return %c0_i32, %c0_i32_0 : i32, i32
  }
  func.func @transform_5(%arg0: i32) -> (i32, i32) {
    %c0_i32 = arith.constant 0 : i32
    %c0_i32_0 = arith.constant 0 : i32
    %c0_i32_1 = arith.constant 0 : i32
    return %c0_i32, %c0_i32_0 : i32, i32
  }
  func.func @transform_6(%arg0: i32) -> (i32, i32) {
    %c0_i32 = arith.constant 0 : i32
    %c0_i32_0 = arith.constant 0 : i32
    %c0_i32_1 = arith.constant 0 : i32
    return %c0_i32, %c0_i32_0 : i32, i32
  }
  func.func @transform_7(%arg0: i32) -> (i32, i32) {
    %c0_i32 = arith.constant 0 : i32
    %c0_i32_0 = arith.constant 0 : i32
    %c0_i32_1 = arith.constant 0 : i32
    return %c0_i32, %c0_i32_0 : i32, i32
  }
  func.func @transform_8(%arg0: i32) -> (i32, i32) {
    %c0_i32 = arith.constant 0 : i32
    %c0_i32_0 = arith.constant 0 : i32
    %c0_i32_1 = arith.constant 0 : i32
    return %c0_i32, %c0_i32_0 : i32, i32
  }
  func.func @transform_9(%arg0: i32) -> (i32, i32) {
    %c0_i32 = arith.constant 0 : i32
    %c0_i32_0 = arith.constant 0 : i32
    %c0_i32_1 = arith.constant 0 : i32
    return %c0_i32, %c0_i32_0 : i32, i32
  }
  func.func @transform_10(%arg0: i32) -> (i32, i32) {
    %c0_i32 = arith.constant 0 : i32
    %c0_i32_0 = arith.constant 0 : i32
    %c0_i32_1 = arith.constant 0 : i32
    return %c0_i32, %c0_i32_0 : i32, i32
  }
  func.func @transform_11(%arg0: i32) -> (i32, i32) {
    %c0_i32 = arith.constant 0 : i32
    %c0_i32_0 = arith.constant 0 : i32
    %c0_i32_1 = arith.constant 0 : i32
    return %c0_i32, %c0_i32_0 : i32, i32
  }
  func.func @transform_12(%arg0: i32) -> (i32, i32) {
    %c0_i32 = arith.constant 0 : i32
    %c0_i32_0 = arith.constant 0 : i32
    %c0_i32_1 = arith.constant 0 : i32
    return %c0_i32, %c0_i32_0 : i32, i32
  }
  func.func @transform_13(%arg0: i32) -> (i32, i32) {
    %c0_i32 = arith.constant 0 : i32
    %c0_i32_0 = arith.constant 0 : i32
    %c0_i32_1 = arith.constant 0 : i32
    return %c0_i32, %c0_i32_0 : i32, i32
  }
  func.func @transform_14(%arg0: i32) -> (i32, i32) {
    %c0_i32 = arith.constant 0 : i32
    %c0_i32_0 = arith.constant 0 : i32
    %c0_i32_1 = arith.constant 0 : i32
    return %c0_i32, %c0_i32_0 : i32, i32
  }
  func.func @transform_15(%arg0: i32) -> (i32, i32) {
    %c0_i32 = arith.constant 0 : i32
    %c0_i32_0 = arith.constant 0 : i32
    %c0_i32_1 = arith.constant 0 : i32
    return %c0_i32, %c0_i32_0 : i32, i32
  }
  func.func @transform_16(%arg0: i32) -> (i32, i32) {
    %c0_i32 = arith.constant 0 : i32
    %c0_i32_0 = arith.constant 0 : i32
    %c0_i32_1 = arith.constant 0 : i32
    return %c0_i32, %c0_i32_0 : i32, i32
  }
  func.func @transform_17(%arg0: i32) -> (i32, i32) {
    %c0_i32 = arith.constant 0 : i32
    %c0_i32_0 = arith.constant 0 : i32
    %c0_i32_1 = arith.constant 0 : i32
    return %c0_i32, %c0_i32_0 : i32, i32
  }
  func.func @transform_18(%arg0: i32) -> (i32, i32) {
    %c0_i32 = arith.constant 0 : i32
    %c0_i32_0 = arith.constant 0 : i32
    %c0_i32_1 = arith.constant 0 : i32
    return %c0_i32, %c0_i32_0 : i32, i32
  }
  func.func @transform_19(%arg0: i32) -> (i32, i32) {
    %c0_i32 = arith.constant 0 : i32
    %c0_i32_0 = arith.constant 0 : i32
    %c0_i32_1 = arith.constant 0 : i32
    return %c0_i32, %c0_i32_0 : i32, i32
  }
  func.func @transform_20(%arg0: i32) -> (i32, i32) {
    %c0_i32 = arith.constant 0 : i32
    %c0_i32_0 = arith.constant 0 : i32
    %c0_i32_1 = arith.constant 0 : i32
    return %c0_i32, %c0_i32_0 : i32, i32
  }
  func.func @transform_21(%arg0: i32) -> (i32, i32) {
    %c0_i32 = arith.constant 0 : i32
    %c0_i32_0 = arith.constant 0 : i32
    %c0_i32_1 = arith.constant 0 : i32
    return %c0_i32, %c0_i32_0 : i32, i32
  }
  func.func @transform_22(%arg0: i32) -> (i32, i32, i32) {
    %c0_i32 = arith.constant 0 : i32
    %c0_i32_0 = arith.constant 0 : i32
    %c0_i32_1 = arith.constant 0 : i32
    return %arg0, %c0_i32, %c0_i32_0 : i32, i32, i32
  }
}

</mosaic_0001>

<bundles_post_ra>
// kernel: tpu_custom_call.1
= control target key start
LH: loop header
LB: loop body
LE: loop exit
PB: predicated region body
PF: predicated region fallthrough
CT: control target
= control target key end

     0   :  { %s3893_s0 = inlined_call_operand.hbm [shape: f32[2,8,32], index: 0, kind: input, shape index: {}]   ;;  %s3894_s1 = inlined_call_operand.hbm [shape: f32[2,8,32], index: 1, kind: input, shape index: {}]   ;;  %s3895_s2 = inlined_call_operand.vmem [shape: f32[64,64], index: 2, kind: input, shape index: {}]   ;;  %s3896_s3 = inlined_call_operand.vmem [shape: f32[64,64], index: 3, kind: input, shape index: {}]   ;;  %s3897_s4 = inlined_call_operand.hbm [shape: f32[1,32], index: 4, kind: input, shape index: {}]   ;;  %s3898_s5 = inlined_call_operand.hbm [shape: f32[1,32], index: 5, kind: input, shape index: {}]   ;;  %s3899_s6 = inlined_call_operand.hbm [shape: f32[1,32], index: 6, kind: input, shape index: {}]   ;;  %s3900_s7 = inlined_call_operand.hbm [shape: f32[1,32], index: 7, kind: input, shape index: {}]   ;;  %s3901_s8 = inlined_call_operand.vmem [shape: f32[32,96], index: 8, kind: input, shape index: {}]   ;;  %s3902_s9 = inlined_call_operand.hbm [shape: f32[1,96], index: 9, kind: input, shape index: {}]   ;;  %s3903_s10 = inlined_call_operand.vmem [shape: f32[32,32], index: 10, kind: input, shape index: {}]   ;;  %s3904_s11 = inlined_call_operand.hbm [shape: f32[1,32], index: 11, kind: input, shape index: {}]   ;;  %s3905_s12 = inlined_call_operand.hbm [shape: f32[32,32], index: 12, kind: input, shape index: {}]   ;;  %s3906_s13 = inlined_call_operand.hbm [shape: f32[1,32], index: 13, kind: input, shape index: {}]   ;;  %s3907_s14 = inlined_call_operand.hbm [shape: f32[32,64], index: 14, kind: input, shape index: {}]   ;;  %s3908_s15 = inlined_call_operand.hbm [shape: f32[1,64], index: 15, kind: input, shape index: {}]   ;;  %s3909_s16 = inlined_call_operand.hbm [shape: f32[32,32], index: 16, kind: input, shape index: {}]   ;;  %s3910_s17 = inlined_call_operand.hbm [shape: f32[1,32], index: 17, kind: input, shape index: {}]   ;;  %s3911_s18 = inlined_call_operand.hbm [shape: f32[32,128], index: 18, kind: input, shape index: {}]   ;;  %s3912_s19 = inlined_call_operand.vmem [shape: f32[1,128], index: 19, kind: input, shape index: {}]   ;;  %s3913_s20 = inlined_call_operand.vmem [shape: f32[128,32], index: 20, kind: input, shape index: {}]   ;;  %s3914_s21 = inlined_call_operand.vmem [shape: f32[1,32], index: 21, kind: input, shape index: {}]   ;;  %s3915_s22 = inlined_call_operand.hbm [shape: f32[2,8,32], index: 22, kind: output, shape index: {}]  }
   0x1   :  { %3927 = sst [smem:[#allocation36_spill]] %s3893_s0 }
   0x2   :  { %3928 = sst [smem:[#allocation37_spill]] %s3894_s1 }
   0x3   :  { %3929 = sst [smem:[#allocation38_spill]] %s3895_s2 }
   0x4   :  { %3930 = sst [smem:[#allocation39_spill]] %s3896_s3 }
   0x5   :  { %3931 = sst [smem:[#allocation40_spill]] %s3897_s4 }
   0x6   :  { %3932 = sst [smem:[#allocation41_spill]] %s3898_s5 }
   0x7   :  { %3933 = sst [smem:[#allocation42_spill]] %s3899_s6 }
   0x8   :  { %27 = vsyncpa [#allocation3], 0 }
   0x9   :  { %28 = vsyncpa [#allocation6], 0 }
   0xa   :  { %29 = vsyncpa [#allocation9], 0 }
   0xb   :  { %30 = vsyncpa [#allocation12], 0 }
   0xc   :  { %31 = vsyncpa [#allocation15], 0 }
   0xd   :  { %32 = vsyncpa [#allocation18], 0 }
   0xe   :  { %33 = vsyncpa [#allocation21], 0 }
   0xf   :  { %34 = vsyncpa [#allocation24], 0 }
  0x10   :  { %35 = vsyncpa [#allocation4], 0  ;;  %s3087_s3 = smov [#allocation5]   ;;  %s3088_s29 = smov [#allocation8]  }
  0x11   :  { %s53_s28 = sshll.u32 %s3087_s3, 4  ;;  %s80_s30 = sshll.u32 %s3088_s29, 4  ;;  %s54_s28 = int_to_ptr.vmem [resolvable:$true] %s53_s28  ;;  %s3227_s30 = int_to_ptr.vmem [resolvable:$true] %s80_s30 }
  0x12   :  { %s3934_s23 = sld [smem:[#allocation37_spill]] }
  0x18   :  { %s2717_s1 = scalar_lea.hbm %s3934_s23, 256 }
  0x19   :  { %p2718_p0 = scmp.ne.s32.totalorder %s3934_s23, %s2717_s1  ;;  %p2721_p1 = scmp.lt.u32.totalorder %s2717_s1, %s3934_s23 }
  0x1b   :  { %p2723_p2 = pnand %p2721_p1, %p2718_p0 }
  0x1d   :  { %2726 = shalt.err (!%p2723_p2)
}
  0x1e   :  { %s2727_s26 = scalar_lea.vmem %s54_s28, 256  ;;  %p2732_p4 = scmp.lt.s32.totalorder %s54_s28, %s54_s28 }
  0x1f   :  { %p2728_p3 = scmp.ne.s32.totalorder %s54_s28, %s2727_s26  ;;  %p2733_p5 = scmp.lt.s32.totalorder %s2727_s26, %s2727_s26 }
  0x21   :  { %p2734_p6 = por %p2733_p5, %p2732_p4 }
  0x23   :  { %p2735_p7 = pnand %p2734_p6, %p2728_p3 }
  0x25   :  { %2738 = shalt.err (!%p2735_p7)
}
  0x26   :  { %s3923_s2 = smov 128   ;;  %s3925_s27 = smov 8  }
  0x27   :  { %59 = dma.hbm_to_vmem [thread:$0]  %s3934_s23, 256, %s54_s28, [#allocation6], %s3923_s2, %s3923_s2, %s3925_s27  }
  0x28   :  { %s3935_s1 = sld [smem:[#allocation41_spill]] }
  0x2e   :  { %s2739_s5 = scalar_lea.hbm %s3935_s1, 16 }
  0x2f   :  { %p2740_p8 = scmp.ne.s32.totalorder %s3935_s1, %s2739_s5  ;;  %p2743_p9 = scmp.lt.u32.totalorder %s2739_s5, %s3935_s1 }
  0x31   :  { %p2745_p10 = pnand %p2743_p9, %p2740_p8 }
  0x33   :  { %2748 = shalt.err (!%p2745_p10)
}
  0x34   :  { %s2749_s3 = scalar_lea.vmem %s3227_s30, 16  ;;  %s2753_s28 = scalar_lea.vmem %s3227_s30, 32 }
  0x35   :  { %p2750_p11 = scmp.ne.s32.totalorder %s3227_s30, %s2749_s3  ;;  %p2754_p12 = scmp.lt.s32.totalorder %s3227_s30, %s3227_s30 }
  0x36   :  { %p2755_p13 = scmp.lt.s32.totalorder %s2753_s28, %s2749_s3 }
  0x38   :  { %p2756_p0 = por %p2755_p13, %p2754_p12 }
  0x3a   :  { %p2757_p1 = pnand %p2756_p0, %p2750_p11 }
  0x3c   :  { %2760 = shalt.err (!%p2757_p1)
}
  0x3d   :  { %83 = dma.hbm_to_vmem [thread:$0]  %s3935_s1, 16, %s3227_s30, [#allocation9]  }
  0x3e   :  { %s3091_s4 = smov [#allocation11]   ;;  %s3092_s5 = smov [#allocation14]  }
  0x3f   :  { %s100_s0 = sshll.u32 %s3091_s4, 4  ;;  %s124_s24 = sshll.u32 %s3092_s5, 4  ;;  %s101_s0 = int_to_ptr.vmem [resolvable:$true] %s100_s0  ;;  %s125_s24 = int_to_ptr.vmem [resolvable:$true] %s124_s24 }
  0x40   :  { %s2761_s26 = scalar_lea.hbm %s3900_s7, 16 }
  0x41   :  { %p2762_p2 = scmp.ne.s32.totalorder %s3900_s7, %s2761_s26  ;;  %p2765_p3 = scmp.lt.u32.totalorder %s2761_s26, %s3900_s7 }
  0x43   :  { %p2767_p4 = pnand %p2765_p3, %p2762_p2 }
  0x45   :  { %2770 = shalt.err (!%p2767_p4)
}
  0x46   :  { %s2771_s30 = scalar_lea.vmem %s101_s0, 16  ;;  %s2775_s1 = scalar_lea.vmem %s101_s0, 32 }
  0x47   :  { %p2772_p5 = scmp.ne.s32.totalorder %s101_s0, %s2771_s30  ;;  %p2776_p6 = scmp.lt.s32.totalorder %s101_s0, %s101_s0 }
  0x48   :  { %p2777_p7 = scmp.lt.s32.totalorder %s2775_s1, %s2771_s30 }
  0x4a   :  { %p2778_p8 = por %p2777_p7, %p2776_p6 }
  0x4c   :  { %p2779_p9 = pnand %p2778_p8, %p2772_p5 }
  0x4e   :  { %2782 = shalt.err (!%p2779_p9)
}
  0x4f   :  { %103 = dma.hbm_to_vmem [thread:$0]  %s3900_s7, 16, %s101_s0, [#allocation12]  }
  0x50   :  { %s2783_s5 = scalar_lea.hbm %s3904_s11, 16 }
  0x51   :  { %p2784_p10 = scmp.ne.s32.totalorder %s3904_s11, %s2783_s5  ;;  %p2787_p11 = scmp.lt.u32.totalorder %s2783_s5, %s3904_s11 }
  0x53   :  { %p2789_p12 = pnand %p2787_p11, %p2784_p10 }
  0x55   :  { %2792 = shalt.err (!%p2789_p12)
}
  0x56   :  { %s2793_s3 = scalar_lea.vmem %s125_s24, 16  ;;  %s2797_s28 = scalar_lea.vmem %s125_s24, 32 }
  0x57   :  { %p2794_p13 = scmp.ne.s32.totalorder %s125_s24, %s2793_s3  ;;  %p2798_p0 = scmp.lt.s32.totalorder %s125_s24, %s125_s24 }
  0x58   :  { %p2799_p1 = scmp.lt.s32.totalorder %s2797_s28, %s2793_s3 }
  0x5a   :  { %p2800_p2 = por %p2799_p1, %p2798_p0 }
  0x5c   :  { %p2801_p3 = pnand %p2800_p2, %p2794_p13 }
  0x5e   :  { %2804 = shalt.err (!%p2801_p3)
}
  0x5f   :  { %127 = dma.hbm_to_vmem [thread:$0]  %s3904_s11, 16, %s125_s24, [#allocation15]  }
  0x60   :  { %s3093_s30 = smov [#allocation17]   ;;  %s3094_s23 = smov [#allocation20]  }
  0x61   :  { %s146_s1 = sshll.u32 %s3093_s30, 4  ;;  %s168_s29 = sshll.u32 %s3094_s23, 4  ;;  %s147_s1 = int_to_ptr.vmem [resolvable:$true] %s146_s1  ;;  %s169_s29 = int_to_ptr.vmem [resolvable:$true] %s168_s29 }
  0x62   :  { %s2805_s5 = scalar_lea.hbm %s3906_s13, 16 }
  0x63   :  { %p2806_p4 = scmp.ne.s32.totalorder %s3906_s13, %s2805_s5  ;;  %p2809_p5 = scmp.lt.u32.totalorder %s2805_s5, %s3906_s13 }
  0x65   :  { %p2811_p6 = pnand %p2809_p5, %p2806_p4 }
  0x67   :  { %2814 = shalt.err (!%p2811_p6)
}
  0x68   :  { %s2815_s11 = scalar_lea.vmem %s147_s1, 16  ;;  %s2819_s24 = scalar_lea.vmem %s147_s1, 32 }
  0x69   :  { %p2816_p7 = scmp.ne.s32.totalorder %s147_s1, %s2815_s11  ;;  %p2820_p8 = scmp.lt.s32.totalorder %s147_s1, %s147_s1 }
  0x6a   :  { %p2821_p9 = scmp.lt.s32.totalorder %s2819_s24, %s2815_s11 }
  0x6c   :  { %p2822_p10 = por %p2821_p9, %p2820_p8 }
  0x6e   :  { %p2823_p11 = pnand %p2822_p10, %p2816_p7 }
  0x70   :  { %2826 = shalt.err (!%p2823_p11)
}
  0x71   :  { %149 = dma.hbm_to_vmem [thread:$0]  %s3906_s13, 16, %s147_s1, [#allocation18]  }
  0x72   :  { %s2827_s30 = scalar_lea.hbm %s3908_s15, 16 }
  0x73   :  { %p2828_p12 = scmp.ne.s32.totalorder %s3908_s15, %s2827_s30  ;;  %p2831_p13 = scmp.lt.u32.totalorder %s2827_s30, %s3908_s15 }
  0x75   :  { %p2833_p0 = pnand %p2831_p13, %p2828_p12 }
  0x77   :  { %2836 = shalt.err (!%p2833_p0)
}
  0x78   :  { %s2837_s27 = scalar_lea.vmem %s169_s29, 16  ;;  %s2841_s6 = scalar_lea.vmem %s169_s29, 32 }
  0x79   :  { %p2838_p1 = scmp.ne.s32.totalorder %s169_s29, %s2837_s27  ;;  %p2842_p2 = scmp.lt.s32.totalorder %s169_s29, %s169_s29 }
  0x7a   :  { %p2843_p3 = scmp.lt.s32.totalorder %s2841_s6, %s2837_s27 }
  0x7c   :  { %p2844_p4 = por %p2843_p3, %p2842_p2 }
  0x7e   :  { %p2845_p5 = pnand %p2844_p4, %p2838_p1 }
  0x80   :  { %2848 = shalt.err (!%p2845_p5)
}
  0x81   :  { %171 = dma.hbm_to_vmem [thread:$0]  %s3908_s15, 16, %s169_s29, [#allocation21]  }
  0x82   :  { %s3095_s25 = smov [#allocation23]   ;;  %s3096_s11 = smov [#allocation2]  }
  0x83   :  { %s190_s26 = sshll.u32 %s3095_s25, 4  ;;  %s41_s24 = sshll.u32 %s3096_s11, 4  ;;  %s191_s26 = int_to_ptr.vmem [resolvable:$true] %s190_s26  ;;  %s3310_s24 = int_to_ptr.vmem [resolvable:$true] %s41_s24 }
  0x84   :  { %s2849_s7 = scalar_lea.hbm %s3910_s17, 16 }
  0x85   :  { %p2850_p6 = scmp.ne.s32.totalorder %s3910_s17, %s2849_s7  ;;  %p2853_p7 = scmp.lt.u32.totalorder %s2849_s7, %s3910_s17 }
  0x87   :  { %p2855_p8 = pnand %p2853_p7, %p2850_p6 }
  0x89   :  { %2858 = shalt.err (!%p2855_p8)
}
  0x8a   :  { %s2859_s15 = scalar_lea.vmem %s191_s26, 16  ;;  %s2863_s29 = scalar_lea.vmem %s191_s26, 32 }
  0x8b   :  { %p2860_p9 = scmp.ne.s32.totalorder %s191_s26, %s2859_s15  ;;  %p2864_p10 = scmp.lt.s32.totalorder %s191_s26, %s191_s26 }
  0x8c   :  { %p2865_p11 = scmp.lt.s32.totalorder %s2863_s29, %s2859_s15 }
  0x8e   :  { %p2866_p12 = por %p2865_p11, %p2864_p10 }
  0x90   :  { %p2867_p13 = pnand %p2866_p12, %p2860_p9 }
  0x92   :  { %2870 = shalt.err (!%p2867_p13)
}
  0x93   :  { %193 = dma.hbm_to_vmem [thread:$0]  %s3910_s17, 16, %s191_s26, [#allocation24]  }
  0x94   :  { %s3936_s13 = sld [smem:[#allocation36_spill]] }
  0x9a   :  { %s2871_s1 = scalar_lea.hbm %s3936_s13, 256 }
  0x9b   :  { %p2872_p0 = scmp.ne.s32.totalorder %s3936_s13, %s2871_s1  ;;  %p2875_p1 = scmp.lt.u32.totalorder %s2871_s1, %s3936_s13 }
  0x9d   :  { %p2877_p2 = pnand %p2875_p1, %p2872_p0 }
  0x9f   :  { %2880 = shalt.err (!%p2877_p2)
}
  0xa0   :  { %s2881_s7 = scalar_lea.vmem %s3310_s24, 256  ;;  %p2886_p4 = scmp.lt.s32.totalorder %s3310_s24, %s3310_s24 }
  0xa1   :  { %p2882_p3 = scmp.ne.s32.totalorder %s3310_s24, %s2881_s7  ;;  %p2887_p5 = scmp.lt.s32.totalorder %s2881_s7, %s2881_s7 }
  0xa3   :  { %p2888_p6 = por %p2887_p5, %p2886_p4 }
  0xa5   :  { %p2889_p7 = pnand %p2888_p6, %p2882_p3 }
  0xa7   :  { %2892 = shalt.err (!%p2889_p7)
}
  0xa8   :  { %s3937_s17 = smov 8   ;;  %s3938_s26 = smov 128  }
  0xa9   :  { %47 = dma.hbm_to_vmem [thread:$0]  %s3936_s13, 256, %s3310_s24, [#allocation3], %s3938_s26, %s3938_s26, %s3937_s17  }
  0xaa   :  { %s3097_s23 = smov [#allocation7]   ;;  %s3098_s15 = smov [#allocation10]  }
  0xab   :  { %s70_s2 = sshll.u32 %s3097_s23, 4  ;;  %s90_s29 = sshll.u32 %s3098_s15, 4  ;;  %s71_s2 = int_to_ptr.vmem [resolvable:$true] %s70_s2  ;;  %s91_s29 = int_to_ptr.vmem [resolvable:$true] %s90_s29 }
  0xac   :  { %s3939_s27 = sld [smem:[#allocation40_spill]] }
  0xb2   :  { %s2893_s6 = scalar_lea.hbm %s3939_s27, 16 }
  0xb3   :  { %p2894_p8 = scmp.ne.s32.totalorder %s3939_s27, %s2893_s6  ;;  %p2897_p9 = scmp.lt.u32.totalorder %s2893_s6, %s3939_s27 }
  0xb5   :  { %p2899_p10 = pnand %p2897_p9, %p2894_p8 }
  0xb7   :  { %2902 = shalt.err (!%p2899_p10)
}
  0xb8   :  { %s2903_s24 = scalar_lea.vmem %s71_s2, 16  ;;  %s2907_s13 = scalar_lea.vmem %s71_s2, 32 }
  0xb9   :  { %p2904_p11 = scmp.ne.s32.totalorder %s71_s2, %s2903_s24  ;;  %p2908_p12 = scmp.lt.s32.totalorder %s71_s2, %s71_s2 }
  0xba   :  { %p2909_p13 = scmp.lt.s32.totalorder %s2907_s13, %s2903_s24 }
  0xbc   :  { %p2910_p0 = por %p2909_p13, %p2908_p12 }
  0xbe   :  { %p2911_p1 = pnand %p2910_p0, %p2904_p11 }
  0xc0   :  { %2914 = shalt.err (!%p2911_p1)
}
  0xc1   :  { %73 = dma.hbm_to_vmem [thread:$0]  %s3939_s27, 16, %s71_s2, [#allocation6]  }
  0xc2   :  { %s3940_s23 = sld [smem:[#allocation42_spill]] }
  0xc8   :  { %s2915_s15 = scalar_lea.hbm %s3940_s23, 16 }
  0xc9   :  { %p2916_p2 = scmp.ne.s32.totalorder %s3940_s23, %s2915_s15  ;;  %p2919_p3 = scmp.lt.u32.totalorder %s2915_s15, %s3940_s23 }
  0xcb   :  { %p2921_p4 = pnand %p2919_p3, %p2916_p2 }
  0xcd   :  { %2924 = shalt.err (!%p2921_p4)
}
  0xce   :  { %s2925_s25 = scalar_lea.vmem %s91_s29, 16  ;;  %s2929_s11 = scalar_lea.vmem %s91_s29, 32 }
  0xcf   :  { %p2926_p5 = scmp.ne.s32.totalorder %s91_s29, %s2925_s25  ;;  %p2930_p6 = scmp.lt.s32.totalorder %s91_s29, %s91_s29 }
  0xd0   :  { %p2931_p7 = scmp.lt.s32.totalorder %s2929_s11, %s2925_s25 }
  0xd2   :  { %p2932_p8 = por %p2931_p7, %p2930_p6 }
  0xd4   :  { %p2933_p9 = pnand %p2932_p8, %p2926_p5 }
  0xd6   :  { %2936 = shalt.err (!%p2933_p9)
}
  0xd7   :  { %93 = dma.hbm_to_vmem [thread:$0]  %s3940_s23, 16, %s91_s29, [#allocation9]  }
  0xd8   :  { %s3099_s3 = smov [#allocation13]   ;;  %s3100_s13 = smov [#allocation16]  }
  0xd9   :  { %s112_s24 = sshll.u32 %s3099_s3, 4  ;;  %s133_s28 = sshll.u32 %s3100_s13, 4  ;;  %s113_s24 = int_to_ptr.vmem [resolvable:$true] %s112_s24  ;;  %s3368_s28 = int_to_ptr.vmem [resolvable:$true] %s133_s28 }
  0xda   :  { %s2937_s30 = scalar_lea.hbm %s3902_s9, 16 }
  0xdb   :  { %p2938_p10 = scmp.ne.s32.totalorder %s3902_s9, %s2937_s30  ;;  %p2941_p11 = scmp.lt.u32.totalorder %s2937_s30, %s3902_s9 }
  0xdd   :  { %p2943_p12 = pnand %p2941_p11, %p2938_p10 }
  0xdf   :  { %2946 = shalt.err (!%p2943_p12)
}
  0xe0   :  { %s2947_s29 = scalar_lea.vmem %s113_s24, 16  ;;  %s2951_s23 = scalar_lea.vmem %s113_s24, 32 }
  0xe1   :  { %p2948_p13 = scmp.ne.s32.totalorder %s113_s24, %s2947_s29  ;;  %p2952_p0 = scmp.lt.s32.totalorder %s113_s24, %s113_s24 }
  0xe2   :  { %p2953_p1 = scmp.lt.s32.totalorder %s2951_s23, %s2947_s29 }
  0xe4   :  { %p2954_p2 = por %p2953_p1, %p2952_p0 }
  0xe6   :  { %p2955_p3 = pnand %p2954_p2, %p2948_p13 }
  0xe8   :  { %2958 = shalt.err (!%p2955_p3)
}
  0xe9   :  { %115 = dma.hbm_to_vmem [thread:$0]  %s3902_s9, 16, %s113_s24, [#allocation12]  }
  0xea   :  { %s2959_s27 = scalar_lea.hbm %s3905_s12, 512 }
  0xeb   :  { %p2960_p4 = scmp.ne.s32.totalorder %s3905_s12, %s2959_s27  ;;  %p2963_p5 = scmp.lt.u32.totalorder %s2959_s27, %s3905_s12 }
  0xed   :  { %p2965_p6 = pnand %p2963_p5, %p2960_p4 }
  0xef   :  { %2968 = shalt.err (!%p2965_p6)
}
  0xf0   :  { %s2969_s30 = scalar_lea.vmem %s3368_s28, 512  ;;  %p2974_p8 = scmp.lt.s32.totalorder %s3368_s28, %s3368_s28 }
  0xf1   :  { %p2970_p7 = scmp.ne.s32.totalorder %s3368_s28, %s2969_s30  ;;  %p2975_p9 = scmp.lt.s32.totalorder %s2969_s30, %s2969_s30 }
  0xf3   :  { %p2976_p10 = por %p2975_p9, %p2974_p8 }
  0xf5   :  { %p2977_p11 = pnand %p2976_p10, %p2970_p7 }
  0xf7   :  { %2980 = shalt.err (!%p2977_p11)
}
  0xf8   :  { %139 = dma.hbm_to_vmem [thread:$0]  %s3905_s12, 512, %s3368_s28, [#allocation15], %s3938_s26, %s3938_s26, %s3937_s17  }
  0xf9   :  { %s3101_s15 = smov [#allocation19]   ;;  %s3102_s5 = smov [#allocation22]  }
  0xfa   :  { %s155_s4 = sshll.u32 %s3101_s15, 4  ;;  %s177_s6 = sshll.u32 %s3102_s5, 4  ;;  %s156_s4 = int_to_ptr.vmem [resolvable:$true] %s155_s4  ;;  %s3402_s6 = int_to_ptr.vmem [resolvable:$true] %s177_s6 }
  0xfb   :  { %s2981_s1 = scalar_lea.hbm %s3907_s14, 512 }
  0xfc   :  { %p2982_p12 = scmp.ne.s32.totalorder %s3907_s14, %s2981_s1  ;;  %p2985_p13 = scmp.lt.u32.totalorder %s2981_s1, %s3907_s14 }
  0xfe   :  { %p2987_p0 = pnand %p2985_p13, %p2982_p12 }
 0x100   :  { %2990 = shalt.err (!%p2987_p0)
}
 0x101   :  { %s2991_s12 = scalar_lea.vmem %s156_s4, 512  ;;  %p2996_p2 = scmp.lt.s32.totalorder %s156_s4, %s156_s4 }
 0x102   :  { %p2992_p1 = scmp.ne.s32.totalorder %s156_s4, %s2991_s12  ;;  %p2997_p3 = scmp.lt.s32.totalorder %s2991_s12, %s2991_s12 }
 0x104   :  { %p2998_p4 = por %p2997_p3, %p2996_p2 }
 0x106   :  { %p2999_p5 = pnand %p2998_p4, %p2992_p1 }
 0x108   :  { %3002 = shalt.err (!%p2999_p5)
}
 0x109   :  { %161 = dma.hbm_to_vmem [thread:$0]  %s3907_s14, 512, %s156_s4, [#allocation18], %s3938_s26, %s3938_s26, %s3937_s17  }
 0x10a   :  { %s3003_s0 = scalar_lea.hbm %s3909_s16, 512 }
 0x10b   :  { %p3004_p6 = scmp.ne.s32.totalorder %s3909_s16, %s3003_s0  ;;  %p3007_p7 = scmp.lt.u32.totalorder %s3003_s0, %s3909_s16 }
 0x10d   :  { %p3009_p8 = pnand %p3007_p7, %p3004_p6 }
 0x10f   :  { %3012 = shalt.err (!%p3009_p8)
}
 0x110   :  { %s3013_s5 = scalar_lea.vmem %s3402_s6, 512  ;;  %p3018_p10 = scmp.lt.s32.totalorder %s3402_s6, %s3402_s6 }
 0x111   :  { %p3014_p9 = scmp.ne.s32.totalorder %s3402_s6, %s3013_s5  ;;  %p3019_p11 = scmp.lt.s32.totalorder %s3013_s5, %s3013_s5 }
 0x113   :  { %p3020_p12 = por %p3019_p11, %p3018_p10 }
 0x115   :  { %p3021_p13 = pnand %p3020_p12, %p3014_p9 }
 0x117   :  { %3024 = shalt.err (!%p3021_p13)
}
 0x118   :  { %183 = dma.hbm_to_vmem [thread:$0]  %s3909_s16, 512, %s3402_s6, [#allocation21], %s3938_s26, %s3938_s26, %s3937_s17  }
 0x119   :  { %s3103_s29 = smov [#allocation25]   ;;  %s3025_s11 = scalar_lea.hbm %s3911_s18, 512 }
 0x11a   :  { %s199_s23 = sshll.u32 %s3103_s29, 4  ;;  %p3026_p0 = scmp.ne.s32.totalorder %s3911_s18, %s3025_s11  ;;  %s200_s23 = int_to_ptr.vmem [resolvable:$true] %s199_s23 }
 0x11b   :  { %p3029_p1 = scmp.lt.u32.totalorder %s3025_s11, %s3911_s18 }
 0x11d   :  { %p3031_p2 = pnand %p3029_p1, %p3026_p0 }
 0x11f   :  { %3034 = shalt.err (!%p3031_p2)
}
 0x120   :  { %s3035_s3 = scalar_lea.vmem %s200_s23, 512  ;;  %p3040_p4 = scmp.lt.s32.totalorder %s200_s23, %s200_s23 }
 0x121   :  { %p3036_p3 = scmp.ne.s32.totalorder %s200_s23, %s3035_s3  ;;  %p3041_p5 = scmp.lt.s32.totalorder %s3035_s3, %s3035_s3 }
 0x123   :  { %p3042_p6 = por %p3041_p5, %p3040_p4 }
 0x125   :  { %p3043_p7 = pnand %p3042_p6, %p3036_p3 }
 0x127   :  { %3046 = shalt.err (!%p3043_p7)
}
 0x128   :  { %205 = dma.hbm_to_vmem [thread:$0]  %s3911_s18, 512, %s200_s23, [#allocation24], %s3938_s26, %s3938_s26, %s3937_s17  }
 0x129   :  { %3069 = dma.done.wait [#allocation3], 256  }
 0x12a   :  { %3070 = vsyncadd [#allocation3], 4294967040 }
 0x12b   :  { %3071 = dma.done.wait [#allocation6], 272  }
 0x12c   :  { %3072 = vsyncadd [#allocation6], 4294967024 }
 0x12d   :  { %3073 = dma.done.wait [#allocation9], 32  }
 0x12e   :  { %3074 = vsyncadd [#allocation9], 4294967264 }
 0x12f   :  { %3075 = dma.done.wait [#allocation12], 32  }
 0x130   :  { %3076 = vsyncadd [#allocation12], 4294967264 }
 0x131   :  { %3077 = dma.done.wait [#allocation15], 528  }
 0x132   :  { %3078 = vsyncadd [#allocation15], 4294966768 }
 0x133   :  { %3079 = dma.done.wait [#allocation18], 528  }
 0x134   :  { %3080 = vsyncadd [#allocation18], 4294966768 }
 0x135   :  { %3081 = dma.done.wait [#allocation21], 528  }
 0x136   :  { %3082 = vsyncadd [#allocation21], 4294966768 }
 0x137   :  { %3083 = dma.done.wait [#allocation24], 528  }
 0x138   :  { %3084 = vsyncadd [#allocation24], 4294966768  ;;  %vm263_vm0 = vcmask 261120   ;;  %v3454_v0 = vld [vmem:[#allocation2] sm:$0xff]  ;;  %v3456_v1 = vld [vmem:[#allocation2 + $0x8] sm:$0xff]  ;;  %vm437_vm1 = vcmask 64512  }
 0x139   :  { %v264_v2 = vsel %vm263_vm0, %v3454_v0, 0.0  ;;  %v267_v3 = vsel %vm263_vm0, %v3456_v1, 0.0  ;;  %v307_v14 = vld [vmem:[%s3901_s8] sm:$0xff]  ;;  %v308_v15 = vld [vmem:[%s3901_s8 + $0x8] sm:$0xff]  ;;  %v309_v16 = vld [vmem:[%s3901_s8 + $0x10] sm:$0xff]  ;;  %s3105_s5 = smov 112  }
 0x13a   :  { %265 = vadd.xlane.f32.xlu0 %v264_v2  ;;  %v2377_v17 = vpack.c.bf16 %v308_v15, %v307_v14  ;;  %v310_v18 = vld [vmem:[%s3901_s8 + $0x18] sm:$0xff]  ;;  %v1975_v27 = vld [vmem:[#allocation7] ss:$0 sm:$0xff]  ;;  %v1976_v29 = vld [vmem:[#allocation8] ss:$0 sm:$0xff]  ;;  %s3104_s8 = smov 120  }
 0x13b   :  { %v2381_v19 = vpack.c.bf16 %v310_v18, %v309_v16  ;;  %v1977_v36 = vld [vmem:[#allocation13] ss:$0 sm:$0xff]  ;;  %s3106_s14 = smov 104   ;;  %s3107_s4 = smov 96   ;;  %vm3501_vm2 = vmpackc.low %vm437_vm1, %vm437_vm1  ;;  %vm575_vm3 = vcmask 523264   ;;  %vm843_vm4 = vcmask 130048  }
 0x13c   :  { %2378 = vmatprep.subr.bf16.mxu1 %v2377_v17  ;;  %s3943_s1 = sld [smem:[#allocation38_spill]]  ;;  %s3108_s9 = smov 64   ;;  %vm846_vm5 = vcmask 195584  }
 0x13d   :  { %2380 = vmatpush3.bf16.msra.mxu1 %v2377_v17  ;;  %s3109_s27 = smov 16  }
 0x13e   :  { %268 = vadd.xlane.f32.xlu0 %v267_v3  ;;  %2382 = vmatprep.subr.bf16.mxu1 %v2381_v19 }
 0x141   :  { %2384 = vmatpush3.bf16.msra.mxu1 %v2381_v19 }
 0x142   :  { %v401_v18 = vld [vmem:[%s3943_s1 + $0x10] sm:$0xff]  ;;  %v404_v19 = vld [vmem:[%s3943_s1 + $0x28] sm:$0xff] }
 0x1c7   :  { %v266_v4 = vpop.xlane.xlu0 %265 }
 0x1c8   :  { %v271_v5 = vmul.f32 0.03125, %v266_v4 }
 0x1ca   :  { %v273_v6 = vsub.f32 %v3454_v0, %v271_v5 }
 0x1cb   :  { %v269_v7 = vpop.xlane.xlu0 %268 }
 0x1cc   :  { %v272_v8 = vmul.f32 0.03125, %v269_v7  ;;  %v275_v9 = vmul.f32 %v273_v6, %v273_v6  ;;  %v399_v7 = vld [vmem:[%s3943_s1] sm:$0xff] }
 0x1ce   :  { %v274_v10 = vsub.f32 %v3456_v1, %v272_v8  ;;  %v277_v11 = vsel %vm263_vm0, %v275_v9, 0.0 }
 0x1cf   :  { %278 = vadd.xlane.f32.xlu1 %v277_v11 }
 0x1d0   :  { %v276_v12 = vmul.f32 %v274_v10, %v274_v10 }
 0x1d2   :  { %v280_v13 = vsel %vm263_vm0, %v276_v12, 0.0  ;;  %v402_v12 = vld [vmem:[%s3943_s1 + $0x18] sm:$0xff] }
 0x1d3   :  { %281 = vadd.xlane.f32.xlu1 %v280_v13 }
 0x25c   :  { %v279_v20 = vpop.xlane.xlu1 %278 }
 0x25d   :  { %v283_v21 = vmul.f32 0.03125, %v279_v20 }
 0x25f   :  { %v285_v22 = vadd.f32 1e-05, %v283_v21 }
 0x260   :  { %v282_v23 = vpop.xlane.xlu1 %281 }
 0x261   :  { %2637 = vrsqrt.f32 %v285_v22  ;;  %v284_v24 = vmul.f32 0.03125, %v282_v23 }
 0x263   :  { %v286_v25 = vadd.f32 1e-05, %v284_v24 }
 0x265   :  { %2639 = vrsqrt.f32 %v286_v25  ;;  %v403_v25 = vld [vmem:[%s3943_s1 + $0x20] sm:$0xff] }
 0x26b   :  { %v2638_v26 = vpop.eup %2637 }
 0x26c   :  { %v289_v28 = vmul.f32 %v2638_v26, %v273_v6  ;;  %v400_v6 = vld [vmem:[%s3943_s1 + $0x8] sm:$0xff]  ;;  %v406_v26 = vld [vmem:[%s3943_s1 + $0x38] sm:$0xff] }
 0x26e   :  { %v297_v30 = vmul.f32 %v1975_v27, %v289_v28 }
 0x26f   :  { %v2640_v31 = vpop.eup %2639 }
 0x270   :  { %v290_v32 = vmul.f32 %v2640_v31, %v274_v10  ;;  %v305_v33 = vadd.f32 %v1976_v29, %v297_v30 }
 0x272   :  { %v298_v34 = vmul.f32 %v1975_v27, %v290_v32  ;;  %2172 = vmatprep.mubr.msk.f32.mxu1 %vm263_vm0, %v305_v33  ;;  %v405_v33 = vld [vmem:[%s3943_s1 + $0x30] sm:$0xff] }
 0x274   :  { %v306_v35 = vadd.f32 %v1976_v29, %v298_v34 }
 0x276   :  { %2173 = vmatmul.mubr.msk.f32.vlgmr.msra.gmra.mrb[0].mxu1 %vm263_vm0, %v306_v35 }
 0x349   :  { %v2174_v37 = vpop.f32.mrb[0].mxu1 }
 0x34a   :  { %v396_v38 = vadd.f32 %v2174_v37, %v1977_v36  ;;  %v390_v39 = vpop.f32.mrb[1].mxu1 }
 0x34b   :  { %v391_v40 = vadd.f32 %v1977_v36, %v390_v39 }
 0x34c   :  { %411 = vrot.lane.b32.xlu1 %v396_v38, %s3104_s8 }
 0x34d   :  { %409 = vrot.lane.b32.xlu0 %v391_v40, %s3104_s8  ;;  %2191 = vmatprep.mubr.msk.f32.mxu1 %vm437_vm1, %v391_v40  ;;  %v3485_v41 = vpack.i.bf16 %v396_v38, %v391_v40 }
 0x350   :  { %413 = vrot.lane.b32.xlu1 %v391_v40, %s3105_s5 }
 0x351   :  { %417 = vrot.lane.b32.xlu0 %v391_v40, %s3106_s14 }
 0x354   :  { %415 = vrot.lane.b32.xlu1 %v396_v38, %s3105_s5 }
 0x355   :  { %2563 = vrot.lane.b32.xlu0 %v3485_v41, %s3107_s4 }
 0x358   :  { %419 = vrot.lane.b32.xlu1 %v396_v38, %s3106_s14 }
 0x3be   :  { %v412_v42 = vpop.permute.xlu1 %411 }
 0x3bf   :  { %v410_v43 = vpop.permute.xlu0 %409 }
 0x3c0   :  { %v3491_v44 = vpack.i.bf16 %v412_v42, %v410_v43 }
 0x3c2   :  { %v414_v45 = vpop.permute.xlu1 %413  ;;  %2568 = vrot.lane.b32.xlu1 %v3491_v44, %s3107_s4 }
 0x3c3   :  { %v418_v46 = vpop.permute.xlu0 %417 }
 0x3c6   :  { %v416_v47 = vpop.permute.xlu1 %415 }
 0x3c7   :  { %v3495_v48 = vpack.i.bf16 %v416_v47, %v414_v45  ;;  %v2564_v49 = vpop.permute.xlu0 %2563 }
 0x3c8   :  { %v2566_v50 = vunpack.i.h.bf16 %v2564_v49  ;;  %v2565_v51 = vunpack.i.l.bf16 %v2564_v49 }
 0x3c9   :  { %2573 = vrot.lane.b32.xlu0 %v3495_v48, %s3107_s4 }
 0x3ca   :  { %v2385_v53 = vpack.c.bf16 %v2566_v50, %v2565_v51  ;;  %v420_v54 = vpop.permute.xlu1 %419 }
 0x3cb   :  { %v3505_v55 = vpack.i.bf16 %v420_v54, %v418_v46 }
 0x3cc   :  { %2387 = vmatprep.subr.msk.bf16.mxu1 %vm3501_vm2, %v2385_v53 }
 0x3cd   :  { %2578 = vrot.lane.b32.xlu1 %v3505_v55, %s3107_s4  ;;  %2390 = vmatpush3.bf16.xpose.msk.msra.mxu1 %vm3501_vm2, %v2385_v53 }
 0x434   :  { %v2569_v56 = vpop.permute.xlu1 %2568 }
 0x435   :  { %v2571_v57 = vunpack.i.h.bf16 %v2569_v56  ;;  %v2570_v58 = vunpack.i.l.bf16 %v2569_v56 }
 0x437   :  { %v2391_v59 = vpack.c.bf16 %v2571_v57, %v2570_v58 }
 0x439   :  { %2393 = vmatprep.subr.msk.bf16.mxu1 %vm3501_vm2, %v2391_v59 }
 0x43a   :  { %2396 = vmatpush3.bf16.xpose.msk.msra.mxu1 %vm3501_vm2, %v2391_v59 }
 0x43b   :  { %v2574_v60 = vpop.permute.xlu0 %2573 }
 0x43c   :  { %v2576_v61 = vunpack.i.h.bf16 %v2574_v60  ;;  %v2575_v62 = vunpack.i.l.bf16 %v2574_v60 }
 0x43e   :  { %v2397_v63 = vpack.c.bf16 %v2576_v61, %v2575_v62 }
 0x43f   :  { %v2579_v2 = vpop.permute.xlu1 %2578 }
 0x440   :  { %v2581_v3 = vunpack.i.h.bf16 %v2579_v2  ;;  %v2580_v4 = vunpack.i.l.bf16 %v2579_v2  ;;  %2399 = vmatprep.subr.msk.bf16.mxu1 %vm3501_vm2, %v2397_v63 }
 0x442   :  { %v2403_v5 = vpack.c.bf16 %v2581_v3, %v2580_v4  ;;  %2402 = vmatpush3.bf16.xpose.msk.msra.mxu1 %vm3501_vm2, %v2397_v63 }
 0x444   :  { %2405 = vmatprep.subr.msk.bf16.mxu1 %vm3501_vm2, %v2403_v5 }
 0x44a   :  { %2408 = vmatpush3.bf16.xpose.msk.msra.mxu1 %vm3501_vm2, %v2403_v5 }
 0x451   :  { %2192 = vmatmul.mubr.msk.f32.vlgmr.msra.gmra.mrb[2].mxu1 %vm437_vm1, %v396_v38 }
 0x452   :  { %2194 = vmatprep.mubr.msk.f32.mxu1 %vm437_vm1, %v410_v43 }
 0x455   :  { %2195 = vmatmul.mubr.msk.f32.gmra.mrb[4].mxu1 %vm437_vm1, %v412_v42 }
 0x456   :  { %2197 = vmatprep.mubr.msk.f32.mxu1 %vm437_vm1, %v414_v45 }
 0x459   :  { %2198 = vmatmul.mubr.msk.f32.gmra.mrb[6].mxu1 %vm437_vm1, %v416_v47 }
 0x45a   :  { %2200 = vmatprep.mubr.msk.f32.mxu1 %vm437_vm1, %v418_v46 }
 0x45d   :  { %2201 = vmatmul.mubr.msk.f32.gmra.mrb[8].mxu1 %vm437_vm1, %v420_v54 }
 0x524   :  { %v2193_v8 = vpop.f32.mrb[2].mxu1 }
 0x525   :  { %v542_v9 = vadd.f32 %v2193_v8, %v400_v6  ;;  %v536_v10 = vpop.f32.mrb[3].mxu1 }
 0x526   :  { %v537_v11 = vadd.f32 %v536_v10, %v399_v7 }
 0x527   :  { %v579_v13 = vsel %vm575_vm3, %v542_v9, -inf }
 0x528   :  { %580 = vmax.xlane.f32.xlu1 %v579_v13  ;;  %v2196_v14 = vpop.f32.mrb[4].mxu1  ;;  %v576_v15 = vsel %vm575_vm3, %v537_v11, -inf }
 0x529   :  { %v552_v16 = vadd.f32 %v2196_v14, %v402_v12  ;;  %v546_v17 = vpop.f32.mrb[5].mxu1  ;;  %577 = vmax.xlane.f32.xlu0 %v576_v15 }
 0x52a   :  { %v547_v21 = vadd.f32 %v546_v17, %v401_v18 }
 0x52b   :  { %v585_v20 = vsel %vm575_vm3, %v552_v16, -inf }
 0x52c   :  { %v2199_v22 = vpop.f32.mrb[6].mxu1  ;;  %v582_v30 = vsel %vm575_vm3, %v547_v21, -inf }
 0x52d   :  { %v562_v23 = vadd.f32 %v2199_v22, %v404_v19  ;;  %v556_v24 = vpop.f32.mrb[7].mxu1  ;;  %586 = vmax.xlane.f32.xlu0 %v585_v20 }
 0x52e   :  { %v557_v28 = vadd.f32 %v556_v24, %v403_v25 }
 0x52f   :  { %v591_v27 = vsel %vm575_vm3, %v562_v23, -inf }
 0x530   :  { %592 = vmax.xlane.f32.xlu1 %v591_v27  ;;  %v2202_v29 = vpop.f32.mrb[8].mxu1  ;;  %v588_v36 = vsel %vm575_vm3, %v557_v28, -inf }
 0x531   :  { %v572_v31 = vadd.f32 %v2202_v29, %v406_v26  ;;  %v566_v32 = vpop.f32.mrb[9].mxu1  ;;  %583 = vmax.xlane.f32.xlu0 %v582_v30 }
 0x532   :  { %v567_v35 = vadd.f32 %v566_v32, %v405_v33 }
 0x533   :  { %v597_v34 = vsel %vm575_vm3, %v572_v31, -inf }
 0x534   :  { %598 = vmax.xlane.f32.xlu1 %v597_v34  ;;  %v594_v37 = vsel %vm575_vm3, %v567_v35, -inf }
 0x535   :  { %589 = vmax.xlane.f32.xlu0 %v588_v36 }
 0x539   :  { %595 = vmax.xlane.f32.xlu0 %v594_v37 }
 0x545   :  { %2588 = vrot.lane.b32.xlu1 %v3491_v44, %s3108_s9 }
 0x54f   :  { %2583 = vrot.lane.b32.xlu0 %v3485_v41, %s3108_s9 }
 0x5b5   :  { %v581_v38 = vpop.xlane.xlu1 %580 }
 0x5b6   :  { %v601_v39 = vsub.f32 %v542_v9, %v581_v38  ;;  %v578_v40 = vpop.xlane.xlu0 %577 }
 0x5b7   :  { %v600_v42 = vsub.f32 %v537_v11, %v578_v40 }
 0x5b8   :  { %v610_v43 = vmul.f32 1.442695, %v601_v39 }
 0x5b9   :  { %v608_v45 = vmul.f32 1.442695, %v600_v42 }
 0x5ba   :  { %2641 = vpow2.f32 %v610_v43  ;;  %v587_v46 = vpop.xlane.xlu0 %586 }
 0x5bb   :  { %2643 = vpow2.f32 %v608_v45  ;;  %v603_v47 = vsub.f32 %v552_v16, %v587_v46 }
 0x5bd   :  { %v614_v49 = vmul.f32 1.442695, %v603_v47  ;;  %v593_v50 = vpop.xlane.xlu1 %592 }
 0x5be   :  { %v605_v51 = vsub.f32 %v562_v23, %v593_v50  ;;  %v584_v53 = vpop.xlane.xlu0 %583 }
 0x5bf   :  { %2645 = vpow2.f32 %v614_v49  ;;  %v602_v54 = vsub.f32 %v547_v21, %v584_v53 }
 0x5c0   :  { %v618_v44 = vmul.f32 1.442695, %v605_v51 }
 0x5c1   :  { %v612_v56 = vmul.f32 1.442695, %v602_v54  ;;  %v599_v57 = vpop.xlane.xlu1 %598 }
 0x5c2   :  { %2647 = vpow2.f32 %v618_v44  ;;  %v607_v41 = vsub.f32 %v572_v31, %v599_v57  ;;  %v590_v58 = vpop.xlane.xlu0 %589 }
 0x5c3   :  { %2649 = vpow2.f32 %v612_v56  ;;  %v604_v59 = vsub.f32 %v557_v28, %v590_v58 }
 0x5c4   :  { %v3568_v60 = vpop.eup %2641  ;;  %v622_v61 = vmul.f32 1.442695, %v607_v41 }
 0x5c5   :  { %v2644_v62 = vpop.eup %2643  ;;  %v616_v63 = vmul.f32 1.442695, %v604_v59  ;;  %v627_v2 = vsel %vm575_vm3, %v3568_v60, 0.0  ;;  %v2589_v7 = vpop.permute.xlu1 %2588 }
 0x5c6   :  { %2651 = vpow2.f32 %v622_v61  ;;  %628 = vadd.xlane.f32.xlu1 %v627_v2  ;;  %v596_v3 = vpop.xlane.xlu0 %595  ;;  %v624_v4 = vsel %vm575_vm3, %v2644_v62, 0.0  ;;  %v2591_v14 = vunpack.i.h.bf16 %v2589_v7  ;;  %v2590_v15 = vunpack.i.l.bf16 %v2589_v7  ;;  %v850_v61 = vld [vmem:[%s3903_s10 + $0x8] sm:$0xff]  ;;  %v852_v2 = vld [vmem:[%s3903_s10 + $0x18] sm:$0xff] }
 0x5c7   :  { %2653 = vpow2.f32 %v616_v63  ;;  %v606_v5 = vsub.f32 %v567_v35, %v596_v3  ;;  %625 = vadd.xlane.f32.xlu0 %v624_v4  ;;  %v851_v63 = vld [vmem:[%s3903_s10 + $0x10] sm:$0xff] }
 0x5c8   :  { %v2413_v21 = vpack.c.bf16 %v2591_v14, %v2590_v15  ;;  %v2429_v3 = vpack.c.bf16 %v852_v2, %v851_v63 }
 0x5c9   :  { %v3573_v6 = vpop.eup %2645  ;;  %v620_v8 = vmul.f32 1.442695, %v606_v5 }
 0x5ca   :  { %v2584_v9 = vpop.permute.xlu0 %2583  ;;  %v633_v10 = vsel %vm575_vm3, %v3573_v6, 0.0 }
 0x5cb   :  { %2655 = vpow2.f32 %v620_v8  ;;  %v2586_v11 = vunpack.i.h.bf16 %v2584_v9  ;;  %v2585_v12 = vunpack.i.l.bf16 %v2584_v9  ;;  %634 = vadd.xlane.f32.xlu1 %v633_v10 }
 0x5cc   :  { %v3577_v13 = vpop.eup %2647 }
 0x5cd   :  { %v2650_v16 = vpop.eup %2649  ;;  %v639_v17 = vsel %vm575_vm3, %v3577_v13, 0.0  ;;  %v2409_v18 = vpack.c.bf16 %v2586_v11, %v2585_v12 }
 0x5ce   :  { %v630_v19 = vsel %vm575_vm3, %v2650_v16, 0.0 }
 0x5cf   :  { %640 = vadd.xlane.f32.xlu1 %v639_v17  ;;  %631 = vadd.xlane.f32.xlu0 %v630_v19 }
 0x5d0   :  { %v3582_v20 = vpop.eup %2651  ;;  %2410 = vmatprep.subr.bf16.mxu0 %v2409_v18 }
 0x5d1   :  { %v2654_v22 = vpop.eup %2653  ;;  %2412 = vmatpush3.bf16.msra.mxu0 %v2409_v18  ;;  %v645_v23 = vsel %vm575_vm3, %v3582_v20, 0.0 }
 0x5d2   :  { %2414 = vmatprep.subr.bf16.mxu0 %v2413_v21  ;;  %v636_v24 = vsel %vm575_vm3, %v2654_v22, 0.0 }
 0x5d3   :  { %646 = vadd.xlane.f32.xlu1 %v645_v23  ;;  %637 = vadd.xlane.f32.xlu0 %v636_v24  ;;  %v2004_v24 = vld [vmem:[#allocation14] ss:$0 sm:$0xff] }
 0x5d5   :  { %v2656_v25 = vpop.eup %2655  ;;  %2416 = vmatpush3.bf16.msra.mxu0 %v2413_v21 }
 0x5d6   :  { %v642_v26 = vsel %vm575_vm3, %v2656_v25, 0.0 }
 0x5d7   :  { %643 = vadd.xlane.f32.xlu1 %v642_v26 }
 0x5e8   :  { %2598 = vrot.lane.b32.xlu1 %v3505_v55, %s3108_s9 }
 0x5e9   :  { %2593 = vrot.lane.b32.xlu0 %v3495_v48, %s3108_s9 }
 0x653   :  { %v629_v27 = vpop.xlane.xlu1 %628 }
 0x654   :  { %v626_v28 = vpop.xlane.xlu0 %625 }
 0x655   :  { %2657 = vrcp.f32 %v626_v28 }
 0x656   :  { %2659 = vrcp.f32 %v629_v27 }
 0x658   :  { %v635_v29 = vpop.xlane.xlu1 %634 }
 0x65c   :  { %v641_v30 = vpop.xlane.xlu1 %640  ;;  %v632_v31 = vpop.xlane.xlu0 %631 }
 0x65d   :  { %2661 = vrcp.f32 %v632_v31 }
 0x65e   :  { %2663 = vrcp.f32 %v635_v29 }
 0x65f   :  { %v2658_v32 = vpop.eup %2657 }
 0x660   :  { %v647_v33 = vpop.xlane.xlu1 %646  ;;  %v638_v34 = vpop.xlane.xlu0 %637  ;;  %v649_v35 = vmul.f32 %v2658_v32, %v2644_v62 }
 0x661   :  { %2665 = vrcp.f32 %v638_v34  ;;  %v2660_v45 = vpop.eup %2659  ;;  %v1080_v34 = vld [vmem:[#allocation19 + $0x8] sm:$0xff] }
 0x662   :  { %2219 = vmatprep.mubr.msk.f32.mxu0 %vm575_vm3, %v649_v35  ;;  %2667 = vrcp.f32 %v641_v30  ;;  %v651_v47 = vmul.f32 %v2660_v45, %v3568_v60  ;;  %v849_v60 = vld [vmem:[%s3903_s10] sm:$0xff]  ;;  %s3110_s10 = smov 24  }
 0x663   :  { %v2425_v62 = vpack.c.bf16 %v850_v61, %v849_v60  ;;  %v1081_v35 = vld [vmem:[#allocation19 + $0x10] sm:$0xff] }
 0x664   :  { %v644_v36 = vpop.xlane.xlu1 %643  ;;  %v2594_v37 = vpop.permute.xlu0 %2593 }
 0x665   :  { %v2596_v55 = vunpack.i.h.bf16 %v2594_v37  ;;  %v2595_v38 = vunpack.i.l.bf16 %v2594_v37  ;;  %2669 = vrcp.f32 %v644_v36  ;;  %v1082_v37 = vld [vmem:[#allocation19 + $0x18] sm:$0xff] }
 0x666   :  { %2671 = vrcp.f32 %v647_v33  ;;  %v1079_v33 = vld [vmem:[#allocation19] sm:$0xff] }
 0x667   :  { %v2417_v48 = vpack.c.bf16 %v2596_v55, %v2595_v38  ;;  %v2662_v46 = vpop.eup %2661  ;;  %v2441_v36 = vpack.c.bf16 %v1080_v34, %v1079_v33  ;;  %v259_v55 = vld [vmem:[#allocation5] sm:$0xff]  ;;  %v2445_v38 = vpack.c.bf16 %v1082_v37, %v1081_v35 }
 0x668   :  { %v2599_v39 = vpop.permute.xlu1 %2598  ;;  %v2664_v49 = vpop.eup %2663  ;;  %v653_v50 = vmul.f32 %v2662_v46, %v2650_v16  ;;  %2261 = vmatprep.mubr.msk.f32.mxu1 %vm263_vm0, %v259_v55 }
 0x669   :  { %v2601_v40 = vunpack.i.h.bf16 %v2599_v39  ;;  %v2600_v42 = vunpack.i.l.bf16 %v2599_v39  ;;  %2418 = vmatprep.subr.bf16.mxu0 %v2417_v48  ;;  %v655_v53 = vmul.f32 %v2664_v49, %v3573_v6  ;;  %2442 = vmatprep.subr.bf16.mxu1 %v2441_v36 }
 0x66a   :  { %2420 = vmatpush3.bf16.msra.mxu0 %v2417_v48  ;;  %2444 = vmatpush3.bf16.msra.mxu1 %v2441_v36 }
 0x66b   :  { %v2421_v43 = vpack.c.bf16 %v2601_v40, %v2600_v42  ;;  %v2666_v51 = vpop.eup %2665  ;;  %2446 = vmatprep.subr.bf16.mxu1 %v2445_v38 }
 0x66c   :  { %v2668_v54 = vpop.eup %2667  ;;  %v657_v44 = vmul.f32 %v2666_v51, %v2654_v22  ;;  %v988_v51 = vld [vmem:[#allocation16 + $0x8] sm:$0xff] }
 0x66d   :  { %2422 = vmatprep.subr.bf16.mxu0 %v2421_v43  ;;  %v659_v57 = vmul.f32 %v2668_v54, %v3577_v13  ;;  %v989_v54 = vld [vmem:[#allocation16 + $0x10] sm:$0xff] }
 0x66e   :  { %2424 = vmatpush3.bf16.msra.mxu0 %v2421_v43  ;;  %2448 = vmatpush3.bf16.msra.mxu1 %v2445_v38 }
 0x66f   :  { %v2670_v56 = vpop.eup %2669  ;;  %2426 = vmatprep.subr.bf16.mxu0 %v2425_v62 }
 0x670   :  { %v2672_v41 = vpop.eup %2671  ;;  %v661_v58 = vmul.f32 %v2670_v56, %v2656_v25 }
 0x671   :  { %2220 = vmatmul.mubr.msk.f32.vlgmr.msra.gmra.mrb[0].mxu0 %vm575_vm3, %v651_v47  ;;  %v663_v59 = vmul.f32 %v2672_v41, %v3582_v20 }
 0x672   :  { %2222 = vmatprep.mubr.msk.f32.mxu0 %vm575_vm3, %v653_v50  ;;  %2428 = vmatpush3.bf16.msra.mxu0 %v2425_v62  ;;  %v987_v50 = vld [vmem:[#allocation16] sm:$0xff] }
 0x673   :  { %2430 = vmatprep.subr.bf16.mxu0 %v2429_v3 }
 0x675   :  { %2223 = vmatmul.mubr.msk.f32.gmra.mrb[2].mxu0 %vm575_vm3, %v655_v53  ;;  %v2433_v53 = vpack.c.bf16 %v988_v51, %v987_v50 }
 0x676   :  { %2225 = vmatprep.mubr.msk.f32.mxu0 %vm575_vm3, %v657_v44  ;;  %2432 = vmatpush3.bf16.msra.mxu0 %v2429_v3  ;;  %v990_v44 = vld [vmem:[#allocation16 + $0x18] sm:$0xff] }
 0x677   :  { %2434 = vmatprep.subr.bf16.mxu0 %v2433_v53  ;;  %v2437_v56 = vpack.c.bf16 %v990_v44, %v989_v54 }
 0x679   :  { %2226 = vmatmul.mubr.msk.f32.gmra.mrb[4].mxu0 %vm575_vm3, %v659_v57  ;;  %v2012_v57 = vld [vmem:[#allocation20] ss:$0 sm:$0xff] }
 0x67a   :  { %2228 = vmatprep.mubr.msk.f32.mxu0 %vm575_vm3, %v661_v58 }
 0x67d   :  { %2229 = vmatmul.mubr.msk.f32.gmra.mrb[6].mxu0 %vm575_vm3, %v663_v59 }
 0x744   :  { %v2221_v4 = vpop.f32.mrb[0].mxu0 }
 0x745   :  { %v778_v5 = vpop.f32.mrb[1].mxu0 }
 0x748   :  { %v2224_v6 = vpop.f32.mrb[2].mxu0 }
 0x749   :  { %821 = vrot.lane.b32.xlu1 %v2224_v6, %s3937_s17  ;;  %v788_v7 = vpop.f32.mrb[3].mxu0 }
 0x74a   :  { %819 = vrot.lane.b32.xlu0 %v788_v7, %s3937_s17 }
 0x74c   :  { %v2227_v8 = vpop.f32.mrb[4].mxu0 }
 0x74d   :  { %829 = vrot.lane.b32.xlu1 %v2227_v8, %s3109_s27  ;;  %v798_v9 = vpop.f32.mrb[5].mxu0  ;;  %v3656_v8 = vld [vmem:[#allocation10] ss:$0 sm:$0xff] }
 0x74e   :  { %827 = vrot.lane.b32.xlu0 %v798_v9, %s3109_s27 }
 0x750   :  { %v2230_v10 = vpop.f32.mrb[6].mxu0 }
 0x751   :  { %837 = vrot.lane.b32.xlu1 %v2230_v10, %s3110_s10  ;;  %v808_v11 = vpop.f32.mrb[7].mxu0  ;;  %v3658_v10 = vld [vmem:[#allocation11] ss:$0 sm:$0xff] }
 0x752   :  { %835 = vrot.lane.b32.xlu0 %v808_v11, %s3110_s10 }
 0x7bb   :  { %v822_v12 = vpop.permute.xlu1 %821 }
 0x7bc   :  { %v820_v13 = vpop.permute.xlu0 %819  ;;  %v842_v18 = vsel %vm437_vm1, %v2221_v4, %v822_v12 }
 0x7bd   :  { %v841_v16 = vsel %vm437_vm1, %v778_v5, %v820_v13 }
 0x7bf   :  { %v830_v14 = vpop.permute.xlu1 %829 }
 0x7c0   :  { %v828_v15 = vpop.permute.xlu0 %827  ;;  %v845_v21 = vsel %vm843_vm4, %v842_v18, %v830_v14 }
 0x7c1   :  { %v844_v19 = vsel %vm843_vm4, %v841_v16, %v828_v15 }
 0x7c3   :  { %v838_v17 = vpop.permute.xlu1 %837 }
 0x7c4   :  { %v836_v20 = vpop.permute.xlu0 %835  ;;  %v848_v23 = vsel %vm846_vm5, %v845_v21, %v838_v17 }
 0x7c5   :  { %v847_v22 = vsel %vm846_vm5, %v844_v19, %v836_v20 }
 0x7c6   :  { %2239 = vmatprep.mubr.msk.f32.mxu0 %vm263_vm0, %v847_v22 }
 0x7c7   :  { %2240 = vmatmul.mubr.msk.f32.vlgmr.msra.gmra.mrb[8].mxu0 %vm263_vm0, %v848_v23 }
 0x7c8   :  { %2436 = vmatpush3.bf16.msra.mxu0 %v2433_v53 }
 0x7c9   :  { %2438 = vmatprep.subr.bf16.mxu0 %v2437_v56 }
 0x7cc   :  { %2440 = vmatpush3.bf16.msra.mxu0 %v2437_v56 }
 0x89a   :  { %v2241_v25 = vpop.f32.mrb[8].mxu0 }
 0x89b   :  { %v938_v26 = vadd.f32 %v2241_v25, %v2004_v24  ;;  %v932_v27 = vpop.f32.mrb[9].mxu0 }
 0x89c   :  { %v933_v28 = vadd.f32 %v2004_v24, %v932_v27 }
 0x89d   :  { %v3631_v29 = vadd.f32 %v938_v26, %v3456_v1 }
 0x89e   :  { %v3634_v30 = vadd.f32 %v933_v28, %v3454_v0  ;;  %v260_v0 = vld [vmem:[#allocation5 + $0x8] sm:$0xff] }
 0x89f   :  { %v948_v31 = vsel %vm263_vm0, %v3631_v29, 0.0  ;;  %2262 = vmatmul.mubr.msk.f32.vlgmr.msra.gmra.mrb[10].mxu1 %vm263_vm0, %v260_v0 }
 0x8a0   :  { %949 = vadd.xlane.f32.xlu1 %v948_v31  ;;  %v945_v32 = vsel %vm263_vm0, %v3634_v30, 0.0  ;;  %v2009_v31 = vld [vmem:[#allocation17] ss:$0 sm:$0xff] }
 0x8a1   :  { %946 = vadd.xlane.f32.xlu0 %v945_v32 }
 0x92d   :  { %v950_v1 = vpop.xlane.xlu1 %949 }
 0x92e   :  { %v952_v48 = vmul.f32 0.03125, %v950_v1  ;;  %v947_v39 = vpop.xlane.xlu0 %946 }
 0x92f   :  { %v951_v40 = vmul.f32 0.03125, %v947_v39 }
 0x930   :  { %v954_v42 = vsub.f32 %v3631_v29, %v952_v48 }
 0x931   :  { %v953_v43 = vsub.f32 %v3634_v30, %v951_v40 }
 0x932   :  { %v956_v47 = vmul.f32 %v954_v42, %v954_v42 }
 0x933   :  { %v955_v45 = vmul.f32 %v953_v43, %v953_v43 }
 0x934   :  { %v960_v49 = vsel %vm263_vm0, %v956_v47, 0.0 }
 0x935   :  { %v957_v46 = vsel %vm263_vm0, %v955_v45, 0.0 }
 0x936   :  { %958 = vadd.xlane.f32.xlu0 %v957_v46 }
 0x93a   :  { %961 = vadd.xlane.f32.xlu0 %v960_v49 }
 0x972   :  { %v2263_v41 = vpop.f32.mrb[10].mxu1 }
 0x973   :  { %v1168_v58 = vadd.f32 %v2263_v41, %v2012_v57  ;;  %v1162_v59 = vpop.f32.mrb[11].mxu1 }
 0x974   :  { %v1163_v60 = vadd.f32 %v2012_v57, %v1162_v59 }
 0x976   :  { %v3646_v61 = vpack.i.bf16 %v1168_v58, %v1163_v60  ;;  %v2449_v62 = vpack.c.bf16 %v1168_v58, %v1163_v60 }
 0x978   :  { %2603 = vrot.lane.b32.xlu0 %v3646_v61, %s3104_s8  ;;  %2608 = vrot.lane.b32.xlu1 %v3646_v61, %s3105_s5 }
 0x979   :  { %2451 = vmatprep.subr.msk.bf16.mxu0 %vm3501_vm2, %v2449_v62 }
 0x97c   :  { %2613 = vrot.lane.b32.xlu1 %v3646_v61, %s3106_s14 }
 0x9c3   :  { %v959_v63 = vpop.xlane.xlu0 %958 }
 0x9c4   :  { %v963_v2 = vmul.f32 0.03125, %v959_v63 }
 0x9c6   :  { %v965_v3 = vadd.f32 1e-05, %v963_v2 }
 0x9c7   :  { %v962_v4 = vpop.xlane.xlu0 %961 }
 0x9c8   :  { %2673 = vrsqrt.f32 %v965_v3  ;;  %v964_v5 = vmul.f32 0.03125, %v962_v4 }
 0x9ca   :  { %v966_v6 = vadd.f32 1e-05, %v964_v5 }
 0x9cc   :  { %2675 = vrsqrt.f32 %v966_v6 }
 0x9d2   :  { %v2674_v7 = vpop.eup %2673 }
 0x9d3   :  { %v969_v9 = vmul.f32 %v2674_v7, %v953_v43 }
 0x9d5   :  { %v977_v11 = vmul.f32 %v3656_v8, %v969_v9 }
 0x9d6   :  { %v2676_v12 = vpop.eup %2675 }
 0x9d7   :  { %v970_v13 = vmul.f32 %v2676_v12, %v954_v42  ;;  %v985_v14 = vadd.f32 %v3658_v10, %v977_v11 }
 0x9d9   :  { %2250 = vmatprep.mubr.msk.f32.mxu0 %vm263_vm0, %v985_v14  ;;  %v978_v15 = vmul.f32 %v3656_v8, %v970_v13 }
 0x9db   :  { %v986_v16 = vadd.f32 %v3658_v10, %v978_v15 }
 0x9dd   :  { %2251 = vmatmul.mubr.msk.f32.vlgmr.msra.gmra.mrb[10].mxu0 %vm263_vm0, %v986_v16 }
 0x9de   :  { %2454 = vmatpush3.bf16.xpose.msk.msra.mxu0 %vm3501_vm2, %v2449_v62 }
 0x9ea   :  { %v3668_v17 = vpop.permute.xlu0 %2603  ;;  %v3670_v18 = vpop.permute.xlu1 %2608 }
 0x9eb   :  { %v2606_v19 = vunpack.i.h.bf16 %v3668_v17  ;;  %v2605_v20 = vunpack.i.l.bf16 %v3668_v17  ;;  %v2611_v21 = vunpack.i.h.bf16 %v3670_v18  ;;  %v2610_v22 = vunpack.i.l.bf16 %v3670_v18 }
 0x9ed   :  { %v2455_v23 = vpack.c.bf16 %v2606_v19, %v2605_v20  ;;  %v2461_v24 = vpack.c.bf16 %v2611_v21, %v2610_v22 }
 0x9ee   :  { %v3676_v25 = vpop.permute.xlu1 %2613 }
 0x9ef   :  { %2457 = vmatprep.subr.msk.bf16.mxu0 %vm3501_vm2, %v2455_v23  ;;  %v2616_v26 = vunpack.i.h.bf16 %v3676_v25  ;;  %v2615_v27 = vunpack.i.l.bf16 %v3676_v25 }
 0x9f0   :  { %2460 = vmatpush3.bf16.xpose.msk.msra.mxu0 %vm3501_vm2, %v2455_v23 }
 0x9f1   :  { %2463 = vmatprep.subr.msk.bf16.mxu0 %vm3501_vm2, %v2461_v24  ;;  %v2467_v28 = vpack.c.bf16 %v2616_v26, %v2615_v27 }
 0x9f8   :  { %2466 = vmatpush3.bf16.xpose.msk.msra.mxu0 %vm3501_vm2, %v2461_v24 }
 0x9f9   :  { %2469 = vmatprep.subr.msk.bf16.mxu0 %vm3501_vm2, %v2467_v28 }
 0xa00   :  { %2472 = vmatpush3.bf16.xpose.msk.msra.mxu0 %vm3501_vm2, %v2467_v28 }
 0xab0   :  { %v2252_v32 = vpop.f32.mrb[10].mxu0 }
 0xab1   :  { %v1076_v33 = vadd.f32 %v2252_v32, %v2009_v31  ;;  %v1070_v34 = vpop.f32.mrb[11].mxu0 }
 0xab2   :  { %v1071_v35 = vadd.f32 %v2009_v31, %v1070_v34 }
 0xab3   :  { %1183 = vrot.lane.b32.xlu0 %v1076_v33, %s3104_s8 }
 0xab4   :  { %1181 = vrot.lane.b32.xlu1 %v1071_v35, %s3104_s8  ;;  %2280 = vmatprep.mubr.msk.f32.mxu0 %vm437_vm1, %v1071_v35 }
 0xab5   :  { %2281 = vmatmul.mubr.msk.f32.vlgmr.msra.gmra.mrb[12].mxu0 %vm437_vm1, %v1076_v33 }
 0xab7   :  { %1187 = vrot.lane.b32.xlu0 %v1076_v33, %s3105_s5 }
 0xab8   :  { %1185 = vrot.lane.b32.xlu1 %v1071_v35, %s3105_s5  ;;  %s3111_s5 = smov [#allocation26]  }
 0xabb   :  { %1191 = vrot.lane.b32.xlu0 %v1076_v33, %s3106_s14 }
 0xabc   :  { %1189 = vrot.lane.b32.xlu1 %v1071_v35, %s3106_s14  ;;  %s3944_s14 = sld [smem:[#allocation39_spill]] }
 0xac2   :  { %v1172_v1 = vld [vmem:[%s3944_s14 + $0x8] sm:$0xff]  ;;  %v1171_v48 = vld [vmem:[%s3944_s14] sm:$0xff]  ;;  %v1173_v47 = vld [vmem:[%s3944_s14 + $0x10] sm:$0xff] }
 0xac3   :  { %v1174_v50 = vld [vmem:[%s3944_s14 + $0x18] sm:$0xff]  ;;  %v1175_v54 = vld [vmem:[%s3944_s14 + $0x20] sm:$0xff]  ;;  %v1176_v41 = vld [vmem:[%s3944_s14 + $0x28] sm:$0xff] }
 0xac4   :  { %v1177_v60 = vld [vmem:[%s3944_s14 + $0x30] sm:$0xff]  ;;  %v1178_v4 = vld [vmem:[%s3944_s14 + $0x38] sm:$0xff]  ;;  %s1956_s14 = sshll.u32 %s3111_s5, 4  ;;  %s1957_s14 = int_to_ptr.vmem [resolvable:$true] %s1956_s14 }
 0xac5   :  { %s3047_s12 = scalar_lea.vmem %s1957_s14, 256  ;;  %p3052_p9 = scmp.lt.s32.totalorder %s1957_s14, %s1957_s14 }
 0xac6   :  { %p3048_p8 = scmp.ne.s32.totalorder %s1957_s14, %s3047_s12  ;;  %p3053_p10 = scmp.lt.s32.totalorder %s3047_s12, %s3047_s12 }
 0xac8   :  { %p3054_p11 = por %p3053_p10, %p3052_p9 }
 0xaca   :  { %p3055_p12 = pnand %p3054_p11, %p3048_p8 }
 0xb25   :  { %v1184_v52 = vpop.permute.xlu0 %1183 }
 0xb26   :  { %v1182_v36 = vpop.permute.xlu1 %1181 }
 0xb27   :  { %2283 = vmatprep.mubr.msk.f32.mxu0 %vm437_vm1, %v1182_v36 }
 0xb28   :  { %2284 = vmatmul.mubr.msk.f32.gmra.mrb[14].mxu0 %vm437_vm1, %v1184_v52 }
 0xb29   :  { %v1188_v37 = vpop.permute.xlu0 %1187 }
 0xb2a   :  { %v1186_v55 = vpop.permute.xlu1 %1185 }
 0xb2b   :  { %2286 = vmatprep.mubr.msk.f32.mxu0 %vm437_vm1, %v1186_v55 }
 0xb2c   :  { %2287 = vmatmul.mubr.msk.f32.gmra.mrb[16].mxu0 %vm437_vm1, %v1188_v37 }
 0xb2d   :  { %v1192_v0 = vpop.permute.xlu0 %1191 }
 0xb2e   :  { %v1190_v38 = vpop.permute.xlu1 %1189 }
 0xb2f   :  { %2289 = vmatprep.mubr.msk.f32.mxu0 %vm437_vm1, %v1190_v38 }
 0xb30   :  { %2290 = vmatmul.mubr.msk.f32.gmra.mrb[18].mxu0 %vm437_vm1, %v1192_v0 }
 0xb88   :  { %v2282_v39 = vpop.f32.mrb[12].mxu0 }
 0xb89   :  { %v1311_v40 = vadd.f32 %v2282_v39, %v1172_v1  ;;  %v1305_v42 = vpop.f32.mrb[13].mxu0 }
 0xb8a   :  { %v1306_v43 = vadd.f32 %v1305_v42, %v1171_v48 }
 0xb8b   :  { %v1347_v45 = vsel %vm575_vm3, %v1311_v40, -inf }
 0xb8c   :  { %1348 = vmax.xlane.f32.xlu0 %v1347_v45  ;;  %v1344_v46 = vsel %vm575_vm3, %v1306_v43, -inf }
 0xb8d   :  { %1345 = vmax.xlane.f32.xlu1 %v1344_v46 }
 0xbfb   :  { %v2285_v49 = vpop.f32.mrb[14].mxu0 }
 0xbfc   :  { %v1315_v51 = vpop.f32.mrb[15].mxu0  ;;  %v1321_v44 = vadd.f32 %v2285_v49, %v1174_v50 }
 0xbfd   :  { %v1316_v53 = vadd.f32 %v1315_v51, %v1173_v47 }
 0xbfe   :  { %v1353_v2 = vsel %vm575_vm3, %v1321_v44, -inf }
 0xbff   :  { %v2288_v56 = vpop.f32.mrb[16].mxu0  ;;  %v1350_v57 = vsel %vm575_vm3, %v1316_v53, -inf }
 0xc00   :  { %v1325_v58 = vpop.f32.mrb[17].mxu0  ;;  %1351 = vmax.xlane.f32.xlu0 %v1350_v57  ;;  %v1331_v62 = vadd.f32 %v2288_v56, %v1176_v41 }
 0xc01   :  { %v1326_v59 = vadd.f32 %v1325_v58, %v1175_v54 }
 0xc02   :  { %v1359_v9 = vsel %vm575_vm3, %v1331_v62, -inf }
 0xc03   :  { %v2291_v63 = vpop.f32.mrb[18].mxu0  ;;  %v1356_v3 = vsel %vm575_vm3, %v1326_v59, -inf }
 0xc04   :  { %v1335_v5 = vpop.f32.mrb[19].mxu0  ;;  %1354 = vmax.xlane.f32.xlu0 %v1353_v2  ;;  %1357 = vmax.xlane.f32.xlu1 %v1356_v3  ;;  %v1341_v7 = vadd.f32 %v2291_v63, %v1178_v4 }
 0xc05   :  { %v1336_v6 = vadd.f32 %v1335_v5, %v1177_v60 }
 0xc06   :  { %v1365_v12 = vsel %vm575_vm3, %v1341_v7, -inf }
 0xc07   :  { %v1362_v11 = vsel %vm575_vm3, %v1336_v6, -inf }
 0xc08   :  { %1360 = vmax.xlane.f32.xlu0 %v1359_v9  ;;  %1363 = vmax.xlane.f32.xlu1 %v1362_v11 }
 0xc0c   :  { %1366 = vmax.xlane.f32.xlu0 %v1365_v12 }
 0xc19   :  { %v1349_v13 = vpop.xlane.xlu0 %1348  ;;  %2618 = vrot.lane.b32.xlu1 %v3646_v61, %s3107_s4 }
 0xc1a   :  { %v1369_v14 = vsub.f32 %v1311_v40, %v1349_v13  ;;  %v1346_v16 = vpop.xlane.xlu1 %1345 }
 0xc1b   :  { %v1368_v19 = vsub.f32 %v1306_v43, %v1346_v16 }
 0xc1c   :  { %v1378_v15 = vmul.f32 1.442695, %v1369_v14 }
 0xc1d   :  { %v1376_v22 = vmul.f32 1.442695, %v1368_v19 }
 0xc1e   :  { %2677 = vpow2.f32 %v1378_v15 }
 0xc1f   :  { %2679 = vpow2.f32 %v1376_v22 }
 0xc28   :  { %v3740_v20 = vpop.eup %2677 }
 0xc29   :  { %v1395_v21 = vsel %vm575_vm3, %v3740_v20, 0.0  ;;  %v2680_v23 = vpop.eup %2679 }
 0xc2a   :  { %1396 = vadd.xlane.f32.xlu0 %v1395_v21  ;;  %v1392_v24 = vsel %vm575_vm3, %v2680_v23, 0.0 }
 0xc3d   :  { %1393 = vadd.xlane.f32.xlu1 %v1392_v24 }
 0xc8d   :  { %v1352_v26 = vpop.xlane.xlu0 %1351 }
 0xc8e   :  { %v1370_v27 = vsub.f32 %v1316_v53, %v1352_v26 }
 0xc90   :  { %v1380_v61 = vmul.f32 1.442695, %v1370_v27 }
 0xc91   :  { %v1355_v28 = vpop.xlane.xlu0 %1354  ;;  %v1358_v31 = vpop.xlane.xlu1 %1357 }
 0xc92   :  { %2681 = vpow2.f32 %v1380_v61  ;;  %v1371_v32 = vsub.f32 %v1321_v44, %v1355_v28  ;;  %v1372_v33 = vsub.f32 %v1326_v59, %v1358_v31 }
 0xc94   :  { %v1382_v34 = vmul.f32 1.442695, %v1371_v32  ;;  %v1384_v35 = vmul.f32 1.442695, %v1372_v33 }
 0xc95   :  { %v1361_v52 = vpop.xlane.xlu0 %1360  ;;  %v1364_v36 = vpop.xlane.xlu1 %1363 }
 0xc96   :  { %2683 = vpow2.f32 %v1382_v34  ;;  %v1373_v37 = vsub.f32 %v1331_v62, %v1361_v52  ;;  %v1374_v38 = vsub.f32 %v1336_v6, %v1364_v36  ;;  %v1615_v36 = vld [vmem:[#allocation22] sm:$0xff] }
 0xc97   :  { %2685 = vpow2.f32 %v1384_v35 }
 0xc98   :  { %v1386_v55 = vmul.f32 1.442695, %v1373_v37  ;;  %v1388_v43 = vmul.f32 1.442695, %v1374_v38  ;;  %v1616_v37 = vld [vmem:[#allocation22 + $0x8] sm:$0xff]  ;;  %v1617_v38 = vld [vmem:[#allocation22 + $0x10] sm:$0xff] }
 0xc99   :  { %v1367_v0 = vpop.xlane.xlu0 %1366  ;;  %v2619_v1 = vpop.permute.xlu1 %2618 }
 0xc9a   :  { %2687 = vpow2.f32 %v1386_v55  ;;  %v1375_v48 = vsub.f32 %v1341_v7, %v1367_v0  ;;  %v2621_v39 = vunpack.i.h.bf16 %v2619_v1  ;;  %v2620_v40 = vunpack.i.l.bf16 %v2619_v1  ;;  %v1618_v0 = vld [vmem:[#allocation22 + $0x18] sm:$0xff] }
 0xc9b   :  { %v2489_v55 = vpack.c.bf16 %v1616_v37, %v1615_v36  ;;  %v2493_v1 = vpack.c.bf16 %v1618_v0, %v1617_v38 }
 0xc9c   :  { %v3745_v42 = vpop.eup %2681  ;;  %v1390_v45 = vmul.f32 1.442695, %v1375_v48  ;;  %v2473_v46 = vpack.c.bf16 %v2621_v39, %v2620_v40 }
 0xc9d   :  { %v1398_v47 = vsel %vm575_vm3, %v3745_v42, 0.0 }
 0xc9e   :  { %2689 = vpow2.f32 %v1390_v45  ;;  %1399 = vadd.xlane.f32.xlu1 %v1398_v47  ;;  %2474 = vmatprep.subr.bf16.mxu1 %v2473_v46 }
 0xc9f   :  { %2476 = vmatpush3.bf16.msra.mxu1 %v2473_v46  ;;  %2691 = vpow2.f32 %v1388_v43 }
 0xca0   :  { %v3749_v49 = vpop.eup %2683 }
 0xca1   :  { %v3751_v50 = vpop.eup %2685  ;;  %v1401_v51 = vsel %vm575_vm3, %v3749_v49, 0.0 }
 0xca2   :  { %1402 = vadd.xlane.f32.xlu0 %v1401_v51  ;;  %v1404_v53 = vsel %vm575_vm3, %v3751_v50, 0.0 }
 0xca3   :  { %1405 = vadd.xlane.f32.xlu1 %v1404_v53 }
 0xca4   :  { %v3757_v54 = vpop.eup %2687 }
 0xca5   :  { %v1407_v44 = vsel %vm575_vm3, %v3757_v54, 0.0 }
 0xca6   :  { %1408 = vadd.xlane.f32.xlu0 %v1407_v44 }
 0xca8   :  { %v3761_v56 = vpop.eup %2689 }
 0xca9   :  { %v1413_v57 = vsel %vm575_vm3, %v3761_v56, 0.0  ;;  %v2692_v41 = vpop.eup %2691 }
 0xcaa   :  { %1414 = vadd.xlane.f32.xlu0 %v1413_v57  ;;  %v1410_v58 = vsel %vm575_vm3, %v2692_v41, 0.0 }
 0xcae   :  { %1411 = vadd.xlane.f32.xlu0 %v1410_v58 }
 0xcb4   :  { %2628 = vrot.lane.b32.xlu1 %v3670_v18, %s3107_s4 }
 0xcb7   :  { %v1397_v63 = vpop.xlane.xlu0 %1396 }
 0xcb8   :  { %2633 = vrot.lane.b32.xlu1 %v3676_v25, %s3107_s4 }
 0xcc4   :  { %2623 = vrot.lane.b32.xlu0 %v3668_v17, %s3107_s4 }
 0xcca   :  { %v1394_v59 = vpop.xlane.xlu1 %1393 }
 0xccb   :  { %2693 = vrcp.f32 %v1394_v59 }
 0xccc   :  { %2695 = vrcp.f32 %v1397_v63 }
 0xcd5   :  { %v2694_v60 = vpop.eup %2693 }
 0xcd6   :  { %v1417_v62 = vmul.f32 %v2694_v60, %v2680_v23  ;;  %v2696_v22 = vpop.eup %2695 }
 0xcd7   :  { %v1419_v24 = vmul.f32 %v2696_v22, %v3740_v20  ;;  %v1741_v22 = vld [vmem:[#allocation25 + $0x10] sm:$0xff] }
 0xcd8   :  { %2308 = vmatprep.mubr.msk.f32.mxu1 %vm575_vm3, %v1417_v62  ;;  %v2039_v62 = vld [vmem:[#allocation23] ss:$0 sm:$0xff] }
 0xd2b   :  { %v1400_v2 = vpop.xlane.xlu1 %1399 }
 0xd2c   :  { %2697 = vrcp.f32 %v1400_v2 }
 0xd2f   :  { %v1403_v3 = vpop.xlane.xlu0 %1402 }
 0xd30   :  { %v1406_v5 = vpop.xlane.xlu1 %1405  ;;  %2699 = vrcp.f32 %v1403_v3 }
 0xd31   :  { %2701 = vrcp.f32 %v1406_v5 }
 0xd33   :  { %v1409_v4 = vpop.xlane.xlu0 %1408 }
 0xd34   :  { %v2629_v7 = vpop.permute.xlu1 %2628  ;;  %2703 = vrcp.f32 %v1409_v4 }
 0xd35   :  { %v2631_v11 = vunpack.i.h.bf16 %v2629_v7  ;;  %v2630_v25 = vunpack.i.l.bf16 %v2629_v7 }
 0xd36   :  { %v2698_v23 = vpop.eup %2697 }
 0xd37   :  { %v1415_v6 = vpop.xlane.xlu0 %1414  ;;  %v2481_v15 = vpack.c.bf16 %v2631_v11, %v2630_v25  ;;  %v1421_v27 = vmul.f32 %v2698_v23, %v3745_v42  ;;  %v1742_v23 = vld [vmem:[#allocation25 + $0x18] sm:$0xff] }
 0xd38   :  { %v2634_v17 = vpop.permute.xlu1 %2633 }
 0xd39   :  { %v2636_v16 = vunpack.i.h.bf16 %v2634_v17  ;;  %v2635_v19 = vunpack.i.l.bf16 %v2634_v17 }
 0xd3a   :  { %v2700_v26 = vpop.eup %2699 }
 0xd3b   :  { %v1412_v18 = vpop.xlane.xlu0 %1411  ;;  %v2485_v21 = vpack.c.bf16 %v2636_v16, %v2635_v19  ;;  %v2702_v61 = vpop.eup %2701  ;;  %v1423_v28 = vmul.f32 %v2700_v26, %v3749_v49  ;;  %v1739_v16 = vld [vmem:[#allocation25] sm:$0xff]  ;;  %v1740_v19 = vld [vmem:[#allocation25 + $0x8] sm:$0xff] }
 0xd3c   :  { %2705 = vrcp.f32 %v1412_v18  ;;  %v1425_v32 = vmul.f32 %v2702_v61, %v3751_v50  ;;  %v1849_v26 = vld [vmem:[%s3913_s20] sm:$0xff] }
 0xd3d   :  { %2707 = vrcp.f32 %v1415_v6 }
 0xd3e   :  { %v2704_v31 = vpop.eup %2703 }
 0xd3f   :  { %v2624_v9 = vpop.permute.xlu0 %2623  ;;  %v1427_v20 = vmul.f32 %v2704_v31, %v3757_v54 }
 0xd40   :  { %v2626_v12 = vunpack.i.h.bf16 %v2624_v9  ;;  %v2625_v13 = vunpack.i.l.bf16 %v2624_v9 }
 0xd42   :  { %v2477_v14 = vpack.c.bf16 %v2626_v12, %v2625_v13 }
 0xd44   :  { %2478 = vmatprep.subr.bf16.mxu1 %v2477_v14 }
 0xd45   :  { %2480 = vmatpush3.bf16.msra.mxu1 %v2477_v14 }
 0xd46   :  { %2482 = vmatprep.subr.bf16.mxu1 %v2481_v15  ;;  %v2706_v33 = vpop.eup %2705 }
 0xd47   :  { %v2708_v34 = vpop.eup %2707  ;;  %v1429_v35 = vmul.f32 %v2706_v33, %v2692_v41 }
 0xd48   :  { %v1431_v52 = vmul.f32 %v2708_v34, %v3761_v56 }
 0xd49   :  { %2484 = vmatpush3.bf16.msra.mxu1 %v2481_v15 }
 0xd4a   :  { %2486 = vmatprep.subr.bf16.mxu1 %v2485_v21 }
 0xd4d   :  { %2488 = vmatpush3.bf16.msra.mxu1 %v2485_v21  ;;  %v2497_v21 = vpack.c.bf16 %v1740_v19, %v1739_v16 }
 0xd4e   :  { %2490 = vmatprep.subr.bf16.mxu1 %v2489_v55 }
 0xd50   :  { %2309 = vmatmul.mubr.msk.f32.vlgmr.msra.gmra.mrb[12].mxu1 %vm575_vm3, %v1419_v24  ;;  %v2501_v24 = vpack.c.bf16 %v1742_v23, %v1741_v22 }
 0xd51   :  { %2311 = vmatprep.mubr.msk.f32.mxu1 %vm575_vm3, %v1421_v27  ;;  %2492 = vmatpush3.bf16.msra.mxu1 %v2489_v55  ;;  %v1850_v27 = vld [vmem:[%s3913_s20 + $0x8] sm:$0xff] }
 0xd52   :  { %2494 = vmatprep.subr.bf16.mxu1 %v2493_v1  ;;  %v2505_v61 = vpack.c.bf16 %v1850_v27, %v1849_v26 }
 0xd54   :  { %2312 = vmatmul.mubr.msk.f32.gmra.mrb[14].mxu1 %vm575_vm3, %v1423_v28  ;;  %2506 = vmatprep.subr.bf16.mxu0 %v2505_v61 }
 0xd55   :  { %2314 = vmatprep.mubr.msk.f32.mxu1 %vm575_vm3, %v1425_v32  ;;  %2496 = vmatpush3.bf16.msra.mxu1 %v2493_v1 }
 0xd56   :  { %2498 = vmatprep.subr.bf16.mxu1 %v2497_v21  ;;  %2508 = vmatpush3.bf16.msra.mxu0 %v2505_v61 }
 0xd58   :  { %2315 = vmatmul.mubr.msk.f32.gmra.mrb[16].mxu1 %vm575_vm3, %v1427_v20 }
 0xd59   :  { %2317 = vmatprep.mubr.msk.f32.mxu1 %vm575_vm3, %v1429_v35 }
 0xd5c   :  { %2318 = vmatmul.mubr.msk.f32.gmra.mrb[18].mxu1 %vm575_vm3, %v1431_v52 }
 0xe23   :  { %v2310_v48 = vpop.f32.mrb[12].mxu1 }
 0xe24   :  { %v1546_v39 = vpop.f32.mrb[13].mxu1 }
 0xe27   :  { %v2313_v40 = vpop.f32.mrb[14].mxu1 }
 0xe28   :  { %1589 = vrot.lane.b32.xlu1 %v2313_v40, %s3937_s17  ;;  %v1556_v42 = vpop.f32.mrb[15].mxu1 }
 0xe2b   :  { %v2316_v43 = vpop.f32.mrb[16].mxu1 }
 0xe2c   :  { %1587 = vrot.lane.b32.xlu1 %v1556_v42, %s3937_s17  ;;  %1597 = vrot.lane.b32.xlu0 %v2316_v43, %s3109_s27  ;;  %v1566_v45 = vpop.f32.mrb[17].mxu1  ;;  %v1855_v43 = vld [vmem:[%s3913_s20 + $0x30] sm:$0xff] }
 0xe2f   :  { %v2319_v46 = vpop.f32.mrb[18].mxu1 }
 0xe30   :  { %1595 = vrot.lane.b32.xlu1 %v1566_v45, %s3109_s27  ;;  %1605 = vrot.lane.b32.xlu0 %v2319_v46, %s3110_s10  ;;  %v1576_v47 = vpop.f32.mrb[19].mxu1  ;;  %v1856_v45 = vld [vmem:[%s3913_s20 + $0x38] sm:$0xff] }
 0xe31   :  { %v2517_v46 = vpack.c.bf16 %v1856_v45, %v1855_v43 }
 0xe34   :  { %1603 = vrot.lane.b32.xlu1 %v1576_v47, %s3110_s10  ;;  %v1857_v47 = vld [vmem:[%s3913_s20 + $0x40] sm:$0xff] }
 0xe9a   :  { %v1590_v49 = vpop.permute.xlu1 %1589 }
 0xe9b   :  { %v1610_v56 = vsel %vm437_vm1, %v2310_v48, %v1590_v49  ;;  %v1851_v48 = vld [vmem:[%s3913_s20 + $0x10] sm:$0xff]  ;;  %v1858_v49 = vld [vmem:[%s3913_s20 + $0x48] sm:$0xff] }
 0xe9e   :  { %v1588_v50 = vpop.permute.xlu1 %1587  ;;  %v1598_v51 = vpop.permute.xlu0 %1597 }
 0xe9f   :  { %v1609_v54 = vsel %vm437_vm1, %v1546_v39, %v1588_v50  ;;  %v1612_v58 = vsel %vm843_vm4, %v1610_v56, %v1598_v51  ;;  %v1852_v39 = vld [vmem:[%s3913_s20 + $0x18] sm:$0xff]  ;;  %v2521_v50 = vpack.c.bf16 %v1858_v49, %v1857_v47  ;;  %v1859_v51 = vld [vmem:[%s3913_s20 + $0x50] sm:$0xff]  ;;  %v1862_v56 = vld [vmem:[%s3913_s20 + $0x68] sm:$0xff] }
 0xea0   :  { %v2509_v40 = vpack.c.bf16 %v1852_v39, %v1851_v48 }
 0xea2   :  { %v1596_v53 = vpop.permute.xlu1 %1595  ;;  %v1606_v44 = vpop.permute.xlu0 %1605  ;;  %2510 = vmatprep.subr.bf16.mxu0 %v2509_v40 }
 0xea3   :  { %v1611_v57 = vsel %vm843_vm4, %v1609_v54, %v1596_v53  ;;  %v1614_v60 = vsel %vm846_vm5, %v1612_v58, %v1606_v44  ;;  %2512 = vmatpush3.bf16.msra.mxu0 %v2509_v40  ;;  %v1860_v53 = vld [vmem:[%s3913_s20 + $0x58] sm:$0xff]  ;;  %v1861_v44 = vld [vmem:[%s3913_s20 + $0x60] sm:$0xff] }
 0xea4   :  { %v2525_v54 = vpack.c.bf16 %v1860_v53, %v1859_v51  ;;  %v1864_v58 = vld [vmem:[%s3913_s20 + $0x78] sm:$0xff] }
 0xea6   :  { %v1604_v41 = vpop.permute.xlu1 %1603 }
 0xea7   :  { %v1613_v59 = vsel %vm846_vm5, %v1611_v57, %v1604_v41  ;;  %v2529_v57 = vpack.c.bf16 %v1862_v56, %v1861_v44  ;;  %v1863_v41 = vld [vmem:[%s3913_s20 + $0x70] sm:$0xff] }
 0xea8   :  { %2328 = vmatprep.mubr.msk.f32.mxu1 %vm263_vm0, %v1613_v59  ;;  %v2533_v59 = vpack.c.bf16 %v1864_v58, %v1863_v41 }
 0xea9   :  { %2329 = vmatmul.mubr.msk.f32.vlgmr.msra.gmra.mrb[20].mxu1 %vm263_vm0, %v1614_v60  ;;  %v2042_v60 = vld [vmem:[%s3912_s19] ss:$0 sm:$0xff] }
 0xeaa   :  { %2500 = vmatpush3.bf16.msra.mxu1 %v2497_v21 }
 0xeab   :  { %2502 = vmatprep.subr.bf16.mxu1 %v2501_v24 }
 0xeae   :  { %2504 = vmatpush3.bf16.msra.mxu1 %v2501_v24  ;;  %v2045_v24 = vld [vmem:[%s3914_s21] ss:$0 sm:$0xff] }
 0xf7c   :  { %v2330_v63 = vpop.f32.mrb[20].mxu1 }
 0xf7d   :  { %v1704_v2 = vadd.f32 %v2330_v63, %v2039_v62  ;;  %v1698_v3 = vpop.f32.mrb[21].mxu1 }
 0xf7e   :  { %v1699_v4 = vadd.f32 %v2039_v62, %v1698_v3 }
 0xf7f   :  { %v3801_v5 = vadd.f32 %v1704_v2, %v3631_v29 }
 0xf80   :  { %v3804_v6 = vadd.f32 %v1699_v4, %v3634_v30 }
 0xf81   :  { %v1712_v7 = vsel %vm263_vm0, %v3801_v5, 0.0 }
 0xf82   :  { %1713 = vadd.xlane.f32.xlu0 %v1712_v7  ;;  %v1709_v18 = vsel %vm263_vm0, %v3804_v6, 0.0 }
 0xf83   :  { %1710 = vadd.xlane.f32.xlu1 %v1709_v18 }
0x100f   :  { %v1714_v9 = vpop.xlane.xlu0 %1713 }
0x1010   :  { %v1716_v11 = vmul.f32 0.03125, %v1714_v9  ;;  %v1711_v25 = vpop.xlane.xlu1 %1710 }
0x1011   :  { %v1715_v12 = vmul.f32 0.03125, %v1711_v25 }
0x1012   :  { %v1718_v13 = vsub.f32 %v3801_v5, %v1716_v11 }
0x1013   :  { %v1717_v29 = vsub.f32 %v3804_v6, %v1715_v12 }
0x1014   :  { %v1720_v14 = vmul.f32 %v1718_v13, %v1718_v13 }
0x1015   :  { %v1719_v17 = vmul.f32 %v1717_v29, %v1717_v29 }
0x1016   :  { %v1724_v15 = vsel %vm263_vm0, %v1720_v14, 0.0 }
0x1017   :  { %v1721_v30 = vsel %vm263_vm0, %v1719_v17, 0.0 }
0x1018   :  { %1722 = vadd.xlane.f32.xlu0 %v1721_v30 }
0x101c   :  { %1725 = vadd.xlane.f32.xlu0 %v1724_v15 }
0x10a5   :  { %v1723_v28 = vpop.xlane.xlu0 %1722 }
0x10a6   :  { %v1727_v31 = vmul.f32 0.03125, %v1723_v28 }
0x10a8   :  { %v1729_v32 = vadd.f32 1e-05, %v1727_v31 }
0x10a9   :  { %v1726_v33 = vpop.xlane.xlu0 %1725 }
0x10aa   :  { %2709 = vrsqrt.f32 %v1729_v32  ;;  %v1728_v20 = vmul.f32 0.03125, %v1726_v33 }
0x10ac   :  { %v1730_v34 = vadd.f32 1e-05, %v1728_v20 }
0x10ae   :  { %2711 = vrsqrt.f32 %v1730_v34 }
0x10b4   :  { %v2710_v35 = vpop.eup %2709 }
0x10b5   :  { %v1733_v52 = vmul.f32 %v2710_v35, %v1717_v29 }
0x10b7   :  { %v1735_v36 = vmul.f32 %v3656_v8, %v1733_v52 }
0x10b8   :  { %v2712_v37 = vpop.eup %2711 }
0x10b9   :  { %v1734_v55 = vmul.f32 %v2712_v37, %v1718_v13  ;;  %v1737_v38 = vadd.f32 %v3658_v10, %v1735_v36 }
0x10bb   :  { %v1736_v0 = vmul.f32 %v3656_v8, %v1734_v55  ;;  %2339 = vmatprep.mubr.msk.f32.mxu1 %vm263_vm0, %v1737_v38  ;;  %v1853_v8 = vld [vmem:[%s3913_s20 + $0x20] sm:$0xff] }
0x10bd   :  { %v1738_v1 = vadd.f32 %v3658_v10, %v1736_v0  ;;  %v1854_v10 = vld [vmem:[%s3913_s20 + $0x28] sm:$0xff] }
0x10be   :  { %v2513_v42 = vpack.c.bf16 %v1854_v10, %v1853_v8 }
0x10bf   :  { %2340 = vmatmul.mubr.msk.f32.vlgmr.msra.gmra.mrb[22].mxu1 %vm263_vm0, %v1738_v1 }
0x10c0   :  { %2514 = vmatprep.subr.bf16.mxu0 %v2513_v42 }
0x10c1   :  { %2516 = vmatpush3.bf16.msra.mxu0 %v2513_v42 }
0x10c2   :  { %2518 = vmatprep.subr.bf16.mxu0 %v2517_v46 }
0x10c5   :  { %2520 = vmatpush3.bf16.msra.mxu0 %v2517_v46 }
0x10c6   :  { %2522 = vmatprep.subr.bf16.mxu0 %v2521_v50 }
0x10c9   :  { %2524 = vmatpush3.bf16.msra.mxu0 %v2521_v50 }
0x10ca   :  { %2526 = vmatprep.subr.bf16.mxu0 %v2525_v54 }
0x10cd   :  { %2528 = vmatpush3.bf16.msra.mxu0 %v2525_v54 }
0x10ce   :  { %2530 = vmatprep.subr.bf16.mxu0 %v2529_v57 }
0x10d1   :  { %2532 = vmatpush3.bf16.msra.mxu0 %v2529_v57 }
0x10d2   :  { %2534 = vmatprep.subr.bf16.mxu0 %v2533_v59 }
0x10d5   :  { %2536 = vmatpush3.bf16.msra.mxu0 %v2533_v59 }
0x1192   :  { %v2341_v62 = vpop.f32.mrb[22].mxu1 }
0x1193   :  { %v1828_v63 = vadd.f32 %v2341_v62, %v2042_v60  ;;  %v1822_v2 = vpop.f32.mrb[23].mxu1 }
0x1194   :  { %v1823_v3 = vadd.f32 %v2042_v60, %v1822_v2 }
0x1195   :  { %v1834_v4 = vmul.f32 0.044715, %v1828_v63  ;;  %v1832_v21 = vmul.f32 0.5, %v1828_v63 }
0x1196   :  { %v1833_v7 = vmul.f32 0.044715, %v1823_v3  ;;  %v1831_v16 = vmul.f32 0.5, %v1823_v3 }
0x1197   :  { %v1836_v18 = vmul.f32 %v1834_v4, %v1828_v63 }
0x1198   :  { %v1835_v9 = vmul.f32 %v1833_v7, %v1823_v3 }
0x1199   :  { %v1838_v11 = vmul.f32 %v1836_v18, %v1828_v63 }
0x119a   :  { %v1837_v25 = vmul.f32 %v1835_v9, %v1823_v3 }
0x119b   :  { %v1840_v12 = vadd.f32 %v1838_v11, %v1828_v63 }
0x119c   :  { %v1839_v13 = vadd.f32 %v1837_v25, %v1823_v3 }
0x119d   :  { %v1842_v29 = vmul.f32 0.7978846, %v1840_v12 }
0x119e   :  { %v1841_v17 = vmul.f32 0.7978846, %v1839_v13 }
0x119f   :  { %2713 = vtanh.f32 %v1842_v29 }
0x11a0   :  { %2715 = vtanh.f32 %v1841_v17 }
0x11a9   :  { %v2714_v30 = vpop.eup %2713 }
0x11aa   :  { %v2716_v14 = vpop.eup %2715  ;;  %v1846_v15 = vadd.f32 1.0, %v2714_v30 }
0x11ab   :  { %v1845_v19 = vadd.f32 1.0, %v2716_v14 }
0x11ac   :  { %v1848_v23 = vmul.f32 %v1846_v15, %v1832_v21 }
0x11ad   :  { %v1847_v22 = vmul.f32 %v1845_v19, %v1831_v16 }
0x11af   :  { %2374 = vmatprep.mubr.f32.mxu0 %v1847_v22 }
0x11b0   :  { %2375 = vmatmul.mubr.f32.vlgmr.msra.gmra.mrb[20].mxu0 %v1848_v23 }
0x1283   :  { %v2376_v26 = vpop.f32.mrb[20].mxu0 }
0x1284   :  { %v1944_v27 = vadd.f32 %v2376_v26, %v2045_v24  ;;  %v1938_v61 = vpop.f32.mrb[21].mxu0 }
0x1285   :  { %v1939_v28 = vadd.f32 %v2045_v24, %v1938_v61 }
0x1286   :  { %v1948_v31 = vadd.f32 %v1944_v27, %v3801_v5 }
0x1287   :  { %v1947_v32 = vadd.f32 %v1939_v28, %v3804_v6 }
0x1288   :  { %1950 = vst.msk [vmem:[#allocation26 + $0x8] sm:$0xff] %vm263_vm0, %v1948_v31 }
0x1289   :  { %1949 = vst.msk [vmem:[#allocation26] sm:$0xff] %vm263_vm0, %v1947_v32 }
0x128a   :  { %3058 = shalt.err (!%p3055_p12)
}
0x128b   :  { %s3059_s3 = scalar_lea.hbm %s3915_s22, 256 }
0x128c   :  { %p3060_p13 = scmp.ne.s32.totalorder %s3915_s22, %s3059_s3  ;;  %p3063_p0 = scmp.lt.u32.totalorder %s3059_s3, %s3915_s22 }
0x128e   :  { %p3065_p1 = pnand %p3063_p0, %p3060_p13 }
0x1290   :  { %3068 = shalt.err (!%p3065_p1)
}
0x1291   :  { %1962 = dma.vmem_to_hbm [thread:$0]  %s1957_s14, 256, %s3915_s22, [#allocation4], %s3938_s26, %s3938_s26, %s3937_s17  }
0x1292   :  { %3085 = dma.done.wait [#allocation4], 256  }
0x1293   :  { %3086 = vsyncadd [#allocation4], 4294967040 }
0x1294   :  { %1966 = vsyncpa [#allocation3], 1 }
0x1295   :  { %1967 = vsyncpa [#allocation6], 1 }
0x1296   :  { %1968 = vsyncpa [#allocation9], 1 }
0x1297   :  { %1969 = vsyncpa [#allocation12], 1 }
0x1298   :  { %1970 = vsyncpa [#allocation15], 1 }
0x1299   :  { %1971 = vsyncpa [#allocation18], 1 }
0x129a   :  { %1972 = vsyncpa [#allocation21], 1 }
0x129b   :  { %1973 = vsyncpa [#allocation24], 1 }
0x129c   :  { %1974 = vsyncpa [#allocation4], 1 }

</bundles_post_ra>
